<compile_context>
chip_gen: v6e
topology: v6e:2x2x1
jax: 0.10.0
libtpu: 0.0.40
codegen_flags: <defaults>
</compile_context>

<pallas_src>
import functools
import math

import jax
import jax.numpy as jnp
from jax import lax
from jax.experimental import pallas as pl
from jax.experimental.pallas import tpu as pltpu

_SQRT2 = 1.4142135623730951


def _gelu(x):
    # Exact (erf-based) GELU, matching torch.nn.GELU() default.
    return 0.5 * x * (1.0 + lax.erf(x / _SQRT2))


# ---------------- Kernel 1: patch embedding (tiled matmul + bias + GELU) ----------------
def _patch_embed_kernel(x_ref, w_ref, b_ref, o_ref):
    acc = jnp.dot(x_ref[...].astype(jnp.bfloat16), w_ref[...],
                  preferred_element_type=jnp.float32)
    o_ref[...] = _gelu(acc + b_ref[...]).astype(o_ref.dtype)


def patch_embed(patches, w_bf16, b):
    M, K = patches.shape
    N = w_bf16.shape[1]
    # Robust tiling: cdiv grid + zero-padded tail; tm is a multiple of 8.
    tm = min(512, pl.cdiv(M, 8) * 8)           # 512 is v7x-safe; 1024 ok on v5e/v6e
    m_pad = pl.cdiv(M, tm) * tm
    if m_pad != M:
        patches = jnp.pad(patches, ((0, m_pad - M), (0, 0)))
    out = pl.pallas_call(
        _patch_embed_kernel,
        out_shape=jax.ShapeDtypeStruct((m_pad, N), jnp.bfloat16),
        grid_spec=pltpu.PrefetchScalarGridSpec(
            num_scalar_prefetch=0,
            grid=(m_pad // tm,),
            in_specs=[pl.BlockSpec((tm, K), lambda i: (i, 0)),
                      pl.BlockSpec((K, N), lambda i: (0, 0)),
                      pl.BlockSpec((1, N), lambda i: (0, 0))],
            out_specs=pl.BlockSpec((tm, N), lambda i: (i, 0)),
        ),
        compiler_params=pltpu.CompilerParams(dimension_semantics=("parallel",)),
    )(patches, w_bf16, b)
    return out[:M]


# -------- Kernel 2: fused depth stack: depth x [dw KxK + GELU + residual; 1x1; GELU] ----
def _mixer_stack_kernel(x_ref, w_dw_ref, b_dw_ref, w_pw_ref, b_pw_ref, o_ref, state,
                        *, ksize, hp, wp, pad):
    d = pl.program_id(1)
    last = pl.num_programs(1) - 1

    @pl.when(d == 0)
    def _():
        # Zero the halo frame and load this batch element's activation into the
        # interior of the resident VMEM state (input block is fetched once per b).
        state[...] = jnp.zeros_like(state)
        state[pad:pad + hp, pad:pad + wp, :] = x_ref[0].astype(jnp.float32)

    xpad = state[...]                              # (hp+2p, wp+2p, C) f32
    w_dw = w_dw_ref[0]                             # (K, K, C) f32

    # Depthwise KxK conv: one W-shifted copy per dx, reused across dy via cheap
    # outer-axis (H) slices; accumulator seeded with the first tap.
    acc = None
    for dx in range(ksize):
        xs = xpad[:, dx:dx + wp, :]                # (hp+2p, wp, C) pre-shift for this dx
        for dy in range(ksize):
            contrib = xs[dy:dy + hp] * w_dw[dy, dx][None, None, :]
            acc = contrib if acc is None else acc + contrib
    acc = acc + b_dw_ref[0]                        # (hp, wp, C) + (1, C)

    resid = xpad[pad:pad + hp, pad:pad + wp, :]    # original x of this layer
    h = _gelu(acc) + resid                         # ResidualUnit output

    # 1x1 conv on the MXU (bf16 operands, f32 accumulation) + GELU.
    hb = h.reshape(hp * wp, h.shape[-1]).astype(jnp.bfloat16)
    y = jnp.dot(hb, w_pw_ref[0], preferred_element_type=jnp.float32)
    y = _gelu(y + b_pw_ref[0]).reshape(hp, wp, h.shape[-1])

    @pl.when(d < last)
    def _():
        state[pad:pad + hp, pad:pad + wp, :] = y   # stays resident in VMEM

    @pl.when(d == last)
    def _():
        # Sequential's trailing GELU fused here; single bf16 write-back to HBM.
        o_ref[...] = _gelu(y)[None].astype(o_ref.dtype)


def mixer_stack(y, w_dw, b_dw, w_pw_bf16, b_pw, ksize):
    B, Hp, Wp, C = y.shape
    depth = w_dw.shape[0]
    pad = ksize // 2
    kern = functools.partial(_mixer_stack_kernel, ksize=ksize, hp=Hp, wp=Wp, pad=pad)
    return pl.pallas_call(
        kern,
        out_shape=jax.ShapeDtypeStruct((B, Hp, Wp, C), jnp.bfloat16),
        grid_spec=pltpu.PrefetchScalarGridSpec(
            num_scalar_prefetch=0,
            grid=(B, depth),
            in_specs=[pl.BlockSpec((1, Hp, Wp, C), lambda b, d: (b, 0, 0, 0)),
                      pl.BlockSpec((1, ksize, ksize, C), lambda b, d: (d, 0, 0, 0)),
                      pl.BlockSpec((1, 1, C), lambda b, d: (d, 0, 0)),
                      pl.BlockSpec((1, C, C), lambda b, d: (d, 0, 0)),
                      pl.BlockSpec((1, 1, C), lambda b, d: (d, 0, 0))],
            out_specs=pl.BlockSpec((1, Hp, Wp, C), lambda b, d: (b, 0, 0, 0)),
            scratch_shapes=[pltpu.VMEM((Hp + 2 * pad, Wp + 2 * pad, C), jnp.float32)],
        ),
        compiler_params=pltpu.CompilerParams(
            dimension_semantics=("parallel", "arbitrary")),
    )(y, w_dw, b_dw, w_pw_bf16, b_pw)


# -- Kernel 3: fused tail: 3x3 conv (single K=9C matmul) + GELU + global pool + Linear ---
def _tail_kernel(y_ref, w3_ref, b3_ref, wmap_ref, bmap_ref, op_ref, mw_ref, ypad,
                 *, hp, wp, ch):
    # In-kernel halo for the 3x3 conv (padding=1).
    ypad[...] = jnp.zeros_like(ypad)
    ypad[1:1 + hp, 1:1 + wp, :] = y_ref[0].astype(jnp.float32)
    xp = ypad[...]                                       # (hp+2, wp+2, C)

    # im2col blob built in VMEM: 9 taps concatenated on the lane axis -> one MXU
    # matmul with K = 9*C instead of nine K=C matmuls.
    taps = [xp[dy:dy + hp, dx:dx + wp, :] for dy in range(3) for dx in range(3)]
    blob = jnp.concatenate(taps, axis=-1)                # (hp, wp, 9*C)
    blob = blob.reshape(hp * wp, 9 * ch).astype(jnp.bfloat16)

    z = jnp.dot(blob, w3_ref[...], preferred_element_type=jnp.float32)
    z = _gelu(z + b3_ref[...])                           # (hp*wp, P)

    pooled = jnp.mean(z, axis=0, keepdims=True)          # (1, P) == AdaptiveAvgPool2d
    op_ref[...] = pooled[None].astype(op_ref.dtype)      # (1, 1, P)

    mapped = jnp.dot(pooled.astype(jnp.bfloat16), wmap_ref[...],
                     preferred_element_type=jnp.float32) + bmap_ref[...]
    mw_ref[...] = mapped[None].astype(mw_ref.dtype)      # (1, 1, nf//2)


def tail_conv_pool_map(y, w3_bf16, b3, wmap_bf16, bmap):
    B, Hp, Wp, C = y.shape
    P = w3_bf16.shape[-1]
    Nout = wmap_bf16.shape[-1]
    kern = functools.partial(_tail_kernel, hp=Hp, wp=Wp, ch=C)
    out_p, mapped = pl.pallas_call(
        kern,
        out_shape=(jax.ShapeDtypeStruct((B, 1, P), jnp.float32),
                   jax.ShapeDtypeStruct((B, 1, Nout), jnp.float32)),
        grid_spec=pltpu.PrefetchScalarGridSpec(
            num_scalar_prefetch=0,
            grid=(B,),
            in_specs=[pl.BlockSpec((1, Hp, Wp, C), lambda b: (b, 0, 0, 0)),
                      pl.BlockSpec((9 * C, P), lambda b: (0, 0)),
                      pl.BlockSpec((1, P), lambda b: (0, 0)),
                      pl.BlockSpec((P, Nout), lambda b: (0, 0)),
                      pl.BlockSpec((1, Nout), lambda b: (0, 0))],
            out_specs=(pl.BlockSpec((1, 1, P), lambda b: (b, 0, 0)),
                       pl.BlockSpec((1, 1, Nout), lambda b: (b, 0, 0))),
            scratch_shapes=[pltpu.VMEM((Hp + 2, Wp + 2, C), jnp.float32)],
        ),
        compiler_params=pltpu.CompilerParams(dimension_semantics=("parallel",)),
    )(y, w3_bf16, b3, wmap_bf16, bmap)
    return out_p.reshape(B, P), mapped.reshape(B, Nout)


# --------------------------------- parameter init ---------------------------------------
def init_params(key, cfg):
    in_nc, nf, num_params = cfg['in_nc'], cfg['nf'], cfg['num_params']
    ps, ks, depth = cfg['patch_size'], cfg['kernel_size'], cfg['depth']
    keys = iter(jax.random.split(key, 32))

    def w(shape, fan_in, dtype=jnp.float32):
        return (jax.random.normal(next(keys), shape, jnp.float32)
                / math.sqrt(fan_in)).astype(dtype)

    p = {}
    fan_patch = ps * ps * in_nc
    # MXU weights stored bf16 (f32 accumulation inside the kernels).
    # NOTE: patch weight flattening is (kh, kw, cin)->out and the 3x3 head is stored
    # pre-im2col'd as (tap*[C], P) with tap = dy*3+dx; permute torch weights to match.
    p['w_patch'] = w((fan_patch, nf), fan_patch, jnp.bfloat16)
    p['b_patch'] = w((1, nf), fan_patch)
    # Depth-stacked mixer weights (leading depth axis is walked by the depth grid axis).
    p['w_dw'] = w((depth, ks, ks, nf), ks * ks)                     # f32 (VPU path)
    p['b_dw'] = w((depth, 1, nf), ks * ks)
    p['w_pw'] = w((depth, nf, nf), nf, jnp.bfloat16)
    p['b_pw'] = w((depth, 1, nf), nf)
    p['w_conv3'] = w((9 * nf, num_params), 9 * nf, jnp.bfloat16)
    p['b_conv3'] = w((1, num_params), 9 * nf)
    p['w_map'] = w((num_params, nf // 2), num_params, jnp.bfloat16)
    p['b_map'] = w((1, nf // 2), num_params)
    return p


# ------------------------------------- forward ------------------------------------------
def conv_mixer_forward(x_nchw, params, *, cfg):
    ps, ksize, depth = cfg['patch_size'], cfg['kernel_size'], cfg['depth']
    nf = cfg['nf']

    B, Cin, H, W = x_nchw.shape
    Hp, Wp = H // ps, W // ps

    # Patch-embedding conv (kernel == stride == patch_size): build the patch matrix
    # with a SINGLE relayout of the input (the split/merge reshapes are free), then
    # fused matmul + bias + GELU on the MXU; bf16 activation out.
    x = x_nchw.astype(jnp.float32)
    patches = x.reshape(B, Cin, Hp, ps, Wp, ps)
    patches = patches.transpose(0, 2, 4, 3, 5, 1)            # (B, Hp, Wp, kh, kw, Cin)
    patches = patches.reshape(B * Hp * Wp, ps * ps * Cin)
    y = patch_embed(patches, params['w_patch'], params['b_patch'])
    y = y.reshape(B, Hp, Wp, nf)                              # bf16

    # depth x [ResidualUnit(dw KxK + GELU + residual); 1x1 conv; GELU], plus the
    # Sequential's trailing GELU — all inside ONE pallas_call with a VMEM-resident state.
    if depth > 0:
        y = mixer_stack(y, params['w_dw'], params['b_dw'],
                        params['w_pw'], params['b_pw'], ksize)
    else:
        y = jax.nn.gelu(y.astype(jnp.float32), approximate=False).astype(jnp.bfloat16)

    # Fused tail: 3x3 conv (one K=9C matmul) + GELU + global avg pool + MappingNet Linear.
    out_params, mapped_weights = tail_conv_pool_map(
        y, params['w_conv3'], params['b_conv3'], params['w_map'], params['b_map'])
    return out_params, mapped_weights


if __name__ == "__main__":
    key = jax.random.PRNGKey(0)
    kp, kx = jax.random.split(key)

    # Small shapes consistent with the module: B=2, in_nc=3, 16x16 input,
    # nf=32, num_params=16, patch_size=4, kernel_size=5, depth=3.
    cfg = dict(in_nc=3, nf=32, num_params=16, patch_size=4, kernel_size=5, depth=3)
    params = init_params(kp, cfg)

    x = jax.random.normal(kx, (2, cfg['in_nc'], 16, 16), jnp.float32)

    fwd = jax.jit(functools.partial(conv_mixer_forward, cfg=cfg))
    out_params, mapped_weights = fwd(x, params)
    jax.block_until_ready((out_params, mapped_weights))

    assert out_params.shape == (2, cfg['num_params'])
    assert mapped_weights.shape == (2, cfg['nf'] // 2)
    assert jnp.all(jnp.isfinite(out_params)) and jnp.all(jnp.isfinite(mapped_weights))
    print("KERNEL_OK")
</pallas_src>

<mosaic_0001>
module attributes {stable_mosaic.version = 11 : i64} {
  func.func @_patch_embed_kernel(%arg0: i32, %arg1: memref<32x48xf32, #tpu.memory_space<vmem>>, %arg2: memref<48x32xbf16, #tpu.memory_space<vmem>>, %arg3: memref<1x32xf32, #tpu.memory_space<vmem>>, %arg4: memref<32x32xbf16, #tpu.memory_space<vmem>>) attributes {dimension_semantics = [#tpu.dimension_semantics<parallel>], iteration_bounds = array<i64: 1>, scalar_prefetch = 0 : i64, scratch_operands = 0 : i64, tpu.core_type = #tpu.core_type<tc>, window_params = [{transform_indices = @transform_0, window_bounds = array<i64: 32, 48>}, {pipeline_mode = #tpu.pipeline_mode<synchronous>, transform_indices = @transform_1, window_bounds = array<i64: 48, 32>}, {pipeline_mode = #tpu.pipeline_mode<synchronous>, transform_indices = @transform_2, window_bounds = array<i64: 1, 32>}, {transform_indices = @transform_3, window_bounds = array<i64: 32, 32>}]} {
    %c0 = arith.constant 0 : index
    %c0_0 = arith.constant 0 : index
    %0 = vector.load %arg1[%c0, %c0_0] : memref<32x48xf32, #tpu.memory_space<vmem>>, vector<32x48xf32>
    %1 = arith.truncf %0 : vector<32x48xf32> to vector<32x48xbf16>
    %c0_1 = arith.constant 0 : index
    %c0_2 = arith.constant 0 : index
    %2 = vector.load %arg2[%c0_1, %c0_2] : memref<48x32xbf16, #tpu.memory_space<vmem>>, vector<48x32xbf16>
    %cst = arith.constant dense<0.000000e+00> : vector<32x32xf32>
    %3 = tpu.matmul %1, %2, %cst {dimension_numbers = #tpu.dot_dimension_numbers<[1], [0], [0], [1], [0, 0, 1, 1], [], []>} : vector<32x48xbf16>, vector<48x32xbf16>, vector<32x32xf32> -> vector<32x32xf32>
    %c0_3 = arith.constant 0 : index
    %c0_4 = arith.constant 0 : index
    %4 = vector.load %arg3[%c0_3, %c0_4] : memref<1x32xf32, #tpu.memory_space<vmem>>, vector<1x32xf32>
    %5 = vector.broadcast %4 : vector<1x32xf32> to vector<32x32xf32>
    %6 = arith.addf %3, %5 : vector<32x32xf32>
    %cst_5 = arith.constant 5.000000e-01 : f32
    %7 = vector.broadcast %cst_5 : f32 to vector<32x32xf32>
    %8 = arith.mulf %7, %6 : vector<32x32xf32>
    %cst_6 = arith.constant 1.41421354 : f32
    %9 = vector.broadcast %cst_6 : f32 to vector<32x32xf32>
    %10 = arith.divf %6, %9 : vector<32x32xf32>
    %11 = math.erf %10 : vector<32x32xf32>
    %cst_7 = arith.constant 1.000000e+00 : f32
    %12 = vector.broadcast %cst_7 : f32 to vector<32x32xf32>
    %13 = arith.addf %12, %11 : vector<32x32xf32>
    %14 = arith.mulf %8, %13 : vector<32x32xf32>
    %15 = arith.truncf %14 : vector<32x32xf32> to vector<32x32xbf16>
    %c0_8 = arith.constant 0 : index
    %c0_9 = arith.constant 0 : index
    %16 = vector.load %arg4[%c0_8, %c0_9] : memref<32x32xbf16, #tpu.memory_space<vmem>>, vector<32x32xbf16>
    tpu.vector_store %arg4[%c0_8, %c0_9], %15 {strides = array<i32>} : memref<32x32xbf16, #tpu.memory_space<vmem>>, vector<32x32xbf16>,
    return
  }
  func.func @transform_0(%arg0: i32) -> (i32, i32) {
    %c0_i32 = arith.constant 0 : i32
    %c0_i32_0 = arith.constant 0 : i32
    return %arg0, %c0_i32 : i32, i32
  }
  func.func @transform_1(%arg0: i32) -> (i32, i32) {
    %c0_i32 = arith.constant 0 : i32
    %c0_i32_0 = arith.constant 0 : i32
    %c0_i32_1 = arith.constant 0 : i32
    return %c0_i32, %c0_i32_0 : i32, i32
  }
  func.func @transform_2(%arg0: i32) -> (i32, i32) {
    %c0_i32 = arith.constant 0 : i32
    %c0_i32_0 = arith.constant 0 : i32
    %c0_i32_1 = arith.constant 0 : i32
    return %c0_i32, %c0_i32_0 : i32, i32
  }
  func.func @transform_3(%arg0: i32) -> (i32, i32) {
    %c0_i32 = arith.constant 0 : i32
    %c0_i32_0 = arith.constant 0 : i32
    return %arg0, %c0_i32 : i32, i32
  }
}

module attributes {stable_mosaic.version = 11 : i64} {
  func.func @_mixer_stack_kernel(%arg0: i32, %arg1: i32, %arg2: memref<1x4x4x32xbf16, #tpu.memory_space<vmem>>, %arg3: memref<1x5x5x32xf32, #tpu.memory_space<vmem>>, %arg4: memref<1x1x32xf32, #tpu.memory_space<vmem>>, %arg5: memref<1x32x32xbf16, #tpu.memory_space<vmem>>, %arg6: memref<1x1x32xf32, #tpu.memory_space<vmem>>, %arg7: memref<1x4x4x32xbf16, #tpu.memory_space<vmem>>, %arg8: memref<8x8x32xf32, #tpu.memory_space<vmem>>) attributes {dimension_semantics = [#tpu.dimension_semantics<parallel>, #tpu.dimension_semantics<arbitrary>], iteration_bounds = array<i64: 2, 3>, scalar_prefetch = 0 : i64, scratch_operands = 1 : i64, tpu.core_type = #tpu.core_type<tc>, window_params = [{transform_indices = @transform_0, window_bounds = array<i64: 1, 4, 4, 32>}, {transform_indices = @transform_1, window_bounds = array<i64: 1, 5, 5, 32>}, {transform_indices = @transform_2, window_bounds = array<i64: 1, 1, 32>}, {transform_indices = @transform_3, window_bounds = array<i64: 1, 32, 32>}, {transform_indices = @transform_4, window_bounds = array<i64: 1, 1, 32>}, {transform_indices = @transform_5, window_bounds = array<i64: 1, 4, 4, 32>}]} {
    %c0_i32 = arith.constant 0 : i32
    %0 = arith.cmpi eq, %arg1, %c0_i32 : i32
    %1 = arith.extui %0 : i1 to i32
    %c0_i32_0 = arith.constant 0 : i32
    %2 = arith.cmpi ne, %1, %c0_i32_0 : i32
    scf.if %2 {
      %cst_25 = arith.constant 0.000000e+00 : f32
      %224 = vector.broadcast %cst_25 : f32 to vector<8x8x32xf32>
      %c0_26 = arith.constant 0 : index
      %c0_27 = arith.constant 0 : index
      %c0_28 = arith.constant 0 : index
      %225 = vector.load %arg8[%c0_26, %c0_27, %c0_28] : memref<8x8x32xf32, #tpu.memory_space<vmem>>, vector<8x8x32xf32>
      tpu.vector_store %arg8[%c0_26, %c0_27, %c0_28], %224 {strides = array<i32>} : memref<8x8x32xf32, #tpu.memory_space<vmem>>, vector<8x8x32xf32>,
      %c0_29 = arith.constant 0 : index
      %c0_30 = arith.constant 0 : index
      %c0_31 = arith.constant 0 : index
      %c0_32 = arith.constant 0 : index
      %226 = vector.load %arg2[%c0_29, %c0_30, %c0_31, %c0_32] : memref<1x4x4x32xbf16, #tpu.memory_space<vmem>>, vector<1x4x4x32xbf16>
      %227 = vector.shape_cast %226 : vector<1x4x4x32xbf16> to vector<4x4x32xbf16>
      %228 = arith.extf %227 : vector<4x4x32xbf16> to vector<4x4x32xf32>
      %c2 = arith.constant 2 : index
      %c2_33 = arith.constant 2 : index
      %c0_34 = arith.constant 0 : index
      %229 = vector.load %arg8[%c2, %c2_33, %c0_34] : memref<8x8x32xf32, #tpu.memory_space<vmem>>, vector<4x4x32xf32>
      tpu.vector_store %arg8[%c2, %c2_33, %c0_34], %228 {strides = array<i32>} : memref<8x8x32xf32, #tpu.memory_space<vmem>>, vector<4x4x32xf32>,
    } else {
    }
    %c0 = arith.constant 0 : index
    %c0_1 = arith.constant 0 : index
    %c0_2 = arith.constant 0 : index
    %3 = vector.load %arg8[%c0, %c0_1, %c0_2] : memref<8x8x32xf32, #tpu.memory_space<vmem>>, vector<8x8x32xf32>
    %c0_3 = arith.constant 0 : index
    %c0_4 = arith.constant 0 : index
    %c0_5 = arith.constant 0 : index
    %c0_6 = arith.constant 0 : index
    %4 = vector.load %arg3[%c0_3, %c0_4, %c0_5, %c0_6] : memref<1x5x5x32xf32, #tpu.memory_space<vmem>>, vector<1x5x5x32xf32>
    %5 = vector.shape_cast %4 : vector<1x5x5x32xf32> to vector<5x5x32xf32>
    %6 = vector.extract_strided_slice %3 {offsets = [0, 0, 0], sizes = [8, 4, 32], strides = [1, 1, 1]} : vector<8x8x32xf32> to vector<8x4x32xf32>
    %7 = vector.extract_strided_slice %6 {offsets = [0, 0, 0], sizes = [4, 4, 32], strides = [1, 1, 1]} : vector<8x4x32xf32> to vector<4x4x32xf32>
    %8 = vector.extract_strided_slice %5 {offsets = [0, 0, 0], sizes = [1, 1, 32], strides = [1, 1, 1]} : vector<5x5x32xf32> to vector<1x1x32xf32>
    %9 = vector.shape_cast %8 : vector<1x1x32xf32> to vector<32xf32>
    %10 = vector.shape_cast %9 : vector<32xf32> to vector<1x1x32xf32>
    %11 = vector.broadcast %10 : vector<1x1x32xf32> to vector<4x4x32xf32>
    %12 = arith.mulf %7, %11 : vector<4x4x32xf32>
    %13 = vector.extract_strided_slice %6 {offsets = [1, 0, 0], sizes = [4, 4, 32], strides = [1, 1, 1]} : vector<8x4x32xf32> to vector<4x4x32xf32>
    %14 = vector.extract_strided_slice %5 {offsets = [1, 0, 0], sizes = [1, 1, 32], strides = [1, 1, 1]} : vector<5x5x32xf32> to vector<1x1x32xf32>
    %15 = vector.shape_cast %14 : vector<1x1x32xf32> to vector<32xf32>
    %16 = vector.shape_cast %15 : vector<32xf32> to vector<1x1x32xf32>
    %17 = vector.broadcast %16 : vector<1x1x32xf32> to vector<4x4x32xf32>
    %18 = arith.mulf %13, %17 : vector<4x4x32xf32>
    %19 = arith.addf %12, %18 : vector<4x4x32xf32>
    %20 = vector.extract_strided_slice %6 {offsets = [2, 0, 0], sizes = [4, 4, 32], strides = [1, 1, 1]} : vector<8x4x32xf32> to vector<4x4x32xf32>
    %21 = vector.extract_strided_slice %5 {offsets = [2, 0, 0], sizes = [1, 1, 32], strides = [1, 1, 1]} : vector<5x5x32xf32> to vector<1x1x32xf32>
    %22 = vector.shape_cast %21 : vector<1x1x32xf32> to vector<32xf32>
    %23 = vector.shape_cast %22 : vector<32xf32> to vector<1x1x32xf32>
    %24 = vector.broadcast %23 : vector<1x1x32xf32> to vector<4x4x32xf32>
    %25 = arith.mulf %20, %24 : vector<4x4x32xf32>
    %26 = arith.addf %19, %25 : vector<4x4x32xf32>
    %27 = vector.extract_strided_slice %6 {offsets = [3, 0, 0], sizes = [4, 4, 32], strides = [1, 1, 1]} : vector<8x4x32xf32> to vector<4x4x32xf32>
    %28 = vector.extract_strided_slice %5 {offsets = [3, 0, 0], sizes = [1, 1, 32], strides = [1, 1, 1]} : vector<5x5x32xf32> to vector<1x1x32xf32>
    %29 = vector.shape_cast %28 : vector<1x1x32xf32> to vector<32xf32>
    %30 = vector.shape_cast %29 : vector<32xf32> to vector<1x1x32xf32>
    %31 = vector.broadcast %30 : vector<1x1x32xf32> to vector<4x4x32xf32>
    %32 = arith.mulf %27, %31 : vector<4x4x32xf32>
    %33 = arith.addf %26, %32 : vector<4x4x32xf32>
    %34 = vector.extract_strided_slice %6 {offsets = [4, 0, 0], sizes = [4, 4, 32], strides = [1, 1, 1]} : vector<8x4x32xf32> to vector<4x4x32xf32>
    %35 = vector.extract_strided_slice %5 {offsets = [4, 0, 0], sizes = [1, 1, 32], strides = [1, 1, 1]} : vector<5x5x32xf32> to vector<1x1x32xf32>
    %36 = vector.shape_cast %35 : vector<1x1x32xf32> to vector<32xf32>
    %37 = vector.shape_cast %36 : vector<32xf32> to vector<1x1x32xf32>
    %38 = vector.broadcast %37 : vector<1x1x32xf32> to vector<4x4x32xf32>
    %39 = arith.mulf %34, %38 : vector<4x4x32xf32>
    %40 = arith.addf %33, %39 : vector<4x4x32xf32>
    %41 = vector.extract_strided_slice %3 {offsets = [0, 1, 0], sizes = [8, 4, 32], strides = [1, 1, 1]} : vector<8x8x32xf32> to vector<8x4x32xf32>
    %42 = vector.extract_strided_slice %41 {offsets = [0, 0, 0], sizes = [4, 4, 32], strides = [1, 1, 1]} : vector<8x4x32xf32> to vector<4x4x32xf32>
    %43 = vector.extract_strided_slice %5 {offsets = [0, 1, 0], sizes = [1, 1, 32], strides = [1, 1, 1]} : vector<5x5x32xf32> to vector<1x1x32xf32>
    %44 = vector.shape_cast %43 : vector<1x1x32xf32> to vector<32xf32>
    %45 = vector.shape_cast %44 : vector<32xf32> to vector<1x1x32xf32>
    %46 = vector.broadcast %45 : vector<1x1x32xf32> to vector<4x4x32xf32>
    %47 = arith.mulf %42, %46 : vector<4x4x32xf32>
    %48 = arith.addf %40, %47 : vector<4x4x32xf32>
    %49 = vector.extract_strided_slice %41 {offsets = [1, 0, 0], sizes = [4, 4, 32], strides = [1, 1, 1]} : vector<8x4x32xf32> to vector<4x4x32xf32>
    %50 = vector.extract_strided_slice %5 {offsets = [1, 1, 0], sizes = [1, 1, 32], strides = [1, 1, 1]} : vector<5x5x32xf32> to vector<1x1x32xf32>
    %51 = vector.shape_cast %50 : vector<1x1x32xf32> to vector<32xf32>
    %52 = vector.shape_cast %51 : vector<32xf32> to vector<1x1x32xf32>
    %53 = vector.broadcast %52 : vector<1x1x32xf32> to vector<4x4x32xf32>
    %54 = arith.mulf %49, %53 : vector<4x4x32xf32>
    %55 = arith.addf %48, %54 : vector<4x4x32xf32>
    %56 = vector.extract_strided_slice %41 {offsets = [2, 0, 0], sizes = [4, 4, 32], strides = [1, 1, 1]} : vector<8x4x32xf32> to vector<4x4x32xf32>
    %57 = vector.extract_strided_slice %5 {offsets = [2, 1, 0], sizes = [1, 1, 32], strides = [1, 1, 1]} : vector<5x5x32xf32> to vector<1x1x32xf32>
    %58 = vector.shape_cast %57 : vector<1x1x32xf32> to vector<32xf32>
    %59 = vector.shape_cast %58 : vector<32xf32> to vector<1x1x32xf32>
    %60 = vector.broadcast %59 : vector<1x1x32xf32> to vector<4x4x32xf32>
    %61 = arith.mulf %56, %60 : vector<4x4x32xf32>
    %62 = arith.addf %55, %61 : vector<4x4x32xf32>
    %63 = vector.extract_strided_slice %41 {offsets = [3, 0, 0], sizes = [4, 4, 32], strides = [1, 1, 1]} : vector<8x4x32xf32> to vector<4x4x32xf32>
    %64 = vector.extract_strided_slice %5 {offsets = [3, 1, 0], sizes = [1, 1, 32], strides = [1, 1, 1]} : vector<5x5x32xf32> to vector<1x1x32xf32>
    %65 = vector.shape_cast %64 : vector<1x1x32xf32> to vector<32xf32>
    %66 = vector.shape_cast %65 : vector<32xf32> to vector<1x1x32xf32>
    %67 = vector.broadcast %66 : vector<1x1x32xf32> to vector<4x4x32xf32>
    %68 = arith.mulf %63, %67 : vector<4x4x32xf32>
    %69 = arith.addf %62, %68 : vector<4x4x32xf32>
    %70 = vector.extract_strided_slice %41 {offsets = [4, 0, 0], sizes = [4, 4, 32], strides = [1, 1, 1]} : vector<8x4x32xf32> to vector<4x4x32xf32>
    %71 = vector.extract_strided_slice %5 {offsets = [4, 1, 0], sizes = [1, 1, 32], strides = [1, 1, 1]} : vector<5x5x32xf32> to vector<1x1x32xf32>
    %72 = vector.shape_cast %71 : vector<1x1x32xf32> to vector<32xf32>
    %73 = vector.shape_cast %72 : vector<32xf32> to vector<1x1x32xf32>
    %74 = vector.broadcast %73 : vector<1x1x32xf32> to vector<4x4x32xf32>
    %75 = arith.mulf %70, %74 : vector<4x4x32xf32>
    %76 = arith.addf %69, %75 : vector<4x4x32xf32>
    %77 = vector.extract_strided_slice %3 {offsets = [0, 2, 0], sizes = [8, 4, 32], strides = [1, 1, 1]} : vector<8x8x32xf32> to vector<8x4x32xf32>
    %78 = vector.extract_strided_slice %77 {offsets = [0, 0, 0], sizes = [4, 4, 32], strides = [1, 1, 1]} : vector<8x4x32xf32> to vector<4x4x32xf32>
    %79 = vector.extract_strided_slice %5 {offsets = [0, 2, 0], sizes = [1, 1, 32], strides = [1, 1, 1]} : vector<5x5x32xf32> to vector<1x1x32xf32>
    %80 = vector.shape_cast %79 : vector<1x1x32xf32> to vector<32xf32>
    %81 = vector.shape_cast %80 : vector<32xf32> to vector<1x1x32xf32>
    %82 = vector.broadcast %81 : vector<1x1x32xf32> to vector<4x4x32xf32>
    %83 = arith.mulf %78, %82 : vector<4x4x32xf32>
    %84 = arith.addf %76, %83 : vector<4x4x32xf32>
    %85 = vector.extract_strided_slice %77 {offsets = [1, 0, 0], sizes = [4, 4, 32], strides = [1, 1, 1]} : vector<8x4x32xf32> to vector<4x4x32xf32>
    %86 = vector.extract_strided_slice %5 {offsets = [1, 2, 0], sizes = [1, 1, 32], strides = [1, 1, 1]} : vector<5x5x32xf32> to vector<1x1x32xf32>
    %87 = vector.shape_cast %86 : vector<1x1x32xf32> to vector<32xf32>
    %88 = vector.shape_cast %87 : vector<32xf32> to vector<1x1x32xf32>
    %89 = vector.broadcast %88 : vector<1x1x32xf32> to vector<4x4x32xf32>
    %90 = arith.mulf %85, %89 : vector<4x4x32xf32>
    %91 = arith.addf %84, %90 : vector<4x4x32xf32>
    %92 = vector.extract_strided_slice %77 {offsets = [2, 0, 0], sizes = [4, 4, 32], strides = [1, 1, 1]} : vector<8x4x32xf32> to vector<4x4x32xf32>
    %93 = vector.extract_strided_slice %5 {offsets = [2, 2, 0], sizes = [1, 1, 32], strides = [1, 1, 1]} : vector<5x5x32xf32> to vector<1x1x32xf32>
    %94 = vector.shape_cast %93 : vector<1x1x32xf32> to vector<32xf32>
    %95 = vector.shape_cast %94 : vector<32xf32> to vector<1x1x32xf32>
    %96 = vector.broadcast %95 : vector<1x1x32xf32> to vector<4x4x32xf32>
    %97 = arith.mulf %92, %96 : vector<4x4x32xf32>
    %98 = arith.addf %91, %97 : vector<4x4x32xf32>
    %99 = vector.extract_strided_slice %77 {offsets = [3, 0, 0], sizes = [4, 4, 32], strides = [1, 1, 1]} : vector<8x4x32xf32> to vector<4x4x32xf32>
    %100 = vector.extract_strided_slice %5 {offsets = [3, 2, 0], sizes = [1, 1, 32], strides = [1, 1, 1]} : vector<5x5x32xf32> to vector<1x1x32xf32>
    %101 = vector.shape_cast %100 : vector<1x1x32xf32> to vector<32xf32>
    %102 = vector.shape_cast %101 : vector<32xf32> to vector<1x1x32xf32>
    %103 = vector.broadcast %102 : vector<1x1x32xf32> to vector<4x4x32xf32>
    %104 = arith.mulf %99, %103 : vector<4x4x32xf32>
    %105 = arith.addf %98, %104 : vector<4x4x32xf32>
    %106 = vector.extract_strided_slice %77 {offsets = [4, 0, 0], sizes = [4, 4, 32], strides = [1, 1, 1]} : vector<8x4x32xf32> to vector<4x4x32xf32>
    %107 = vector.extract_strided_slice %5 {offsets = [4, 2, 0], sizes = [1, 1, 32], strides = [1, 1, 1]} : vector<5x5x32xf32> to vector<1x1x32xf32>
    %108 = vector.shape_cast %107 : vector<1x1x32xf32> to vector<32xf32>
    %109 = vector.shape_cast %108 : vector<32xf32> to vector<1x1x32xf32>
    %110 = vector.broadcast %109 : vector<1x1x32xf32> to vector<4x4x32xf32>
    %111 = arith.mulf %106, %110 : vector<4x4x32xf32>
    %112 = arith.addf %105, %111 : vector<4x4x32xf32>
    %113 = vector.extract_strided_slice %3 {offsets = [0, 3, 0], sizes = [8, 4, 32], strides = [1, 1, 1]} : vector<8x8x32xf32> to vector<8x4x32xf32>
    %114 = vector.extract_strided_slice %113 {offsets = [0, 0, 0], sizes = [4, 4, 32], strides = [1, 1, 1]} : vector<8x4x32xf32> to vector<4x4x32xf32>
    %115 = vector.extract_strided_slice %5 {offsets = [0, 3, 0], sizes = [1, 1, 32], strides = [1, 1, 1]} : vector<5x5x32xf32> to vector<1x1x32xf32>
    %116 = vector.shape_cast %115 : vector<1x1x32xf32> to vector<32xf32>
    %117 = vector.shape_cast %116 : vector<32xf32> to vector<1x1x32xf32>
    %118 = vector.broadcast %117 : vector<1x1x32xf32> to vector<4x4x32xf32>
    %119 = arith.mulf %114, %118 : vector<4x4x32xf32>
    %120 = arith.addf %112, %119 : vector<4x4x32xf32>
    %121 = vector.extract_strided_slice %113 {offsets = [1, 0, 0], sizes = [4, 4, 32], strides = [1, 1, 1]} : vector<8x4x32xf32> to vector<4x4x32xf32>
    %122 = vector.extract_strided_slice %5 {offsets = [1, 3, 0], sizes = [1, 1, 32], strides = [1, 1, 1]} : vector<5x5x32xf32> to vector<1x1x32xf32>
    %123 = vector.shape_cast %122 : vector<1x1x32xf32> to vector<32xf32>
    %124 = vector.shape_cast %123 : vector<32xf32> to vector<1x1x32xf32>
    %125 = vector.broadcast %124 : vector<1x1x32xf32> to vector<4x4x32xf32>
    %126 = arith.mulf %121, %125 : vector<4x4x32xf32>
    %127 = arith.addf %120, %126 : vector<4x4x32xf32>
    %128 = vector.extract_strided_slice %113 {offsets = [2, 0, 0], sizes = [4, 4, 32], strides = [1, 1, 1]} : vector<8x4x32xf32> to vector<4x4x32xf32>
    %129 = vector.extract_strided_slice %5 {offsets = [2, 3, 0], sizes = [1, 1, 32], strides = [1, 1, 1]} : vector<5x5x32xf32> to vector<1x1x32xf32>
    %130 = vector.shape_cast %129 : vector<1x1x32xf32> to vector<32xf32>
    %131 = vector.shape_cast %130 : vector<32xf32> to vector<1x1x32xf32>
    %132 = vector.broadcast %131 : vector<1x1x32xf32> to vector<4x4x32xf32>
    %133 = arith.mulf %128, %132 : vector<4x4x32xf32>
    %134 = arith.addf %127, %133 : vector<4x4x32xf32>
    %135 = vector.extract_strided_slice %113 {offsets = [3, 0, 0], sizes = [4, 4, 32], strides = [1, 1, 1]} : vector<8x4x32xf32> to vector<4x4x32xf32>
    %136 = vector.extract_strided_slice %5 {offsets = [3, 3, 0], sizes = [1, 1, 32], strides = [1, 1, 1]} : vector<5x5x32xf32> to vector<1x1x32xf32>
    %137 = vector.shape_cast %136 : vector<1x1x32xf32> to vector<32xf32>
    %138 = vector.shape_cast %137 : vector<32xf32> to vector<1x1x32xf32>
    %139 = vector.broadcast %138 : vector<1x1x32xf32> to vector<4x4x32xf32>
    %140 = arith.mulf %135, %139 : vector<4x4x32xf32>
    %141 = arith.addf %134, %140 : vector<4x4x32xf32>
    %142 = vector.extract_strided_slice %113 {offsets = [4, 0, 0], sizes = [4, 4, 32], strides = [1, 1, 1]} : vector<8x4x32xf32> to vector<4x4x32xf32>
    %143 = vector.extract_strided_slice %5 {offsets = [4, 3, 0], sizes = [1, 1, 32], strides = [1, 1, 1]} : vector<5x5x32xf32> to vector<1x1x32xf32>
    %144 = vector.shape_cast %143 : vector<1x1x32xf32> to vector<32xf32>
    %145 = vector.shape_cast %144 : vector<32xf32> to vector<1x1x32xf32>
    %146 = vector.broadcast %145 : vector<1x1x32xf32> to vector<4x4x32xf32>
    %147 = arith.mulf %142, %146 : vector<4x4x32xf32>
    %148 = arith.addf %141, %147 : vector<4x4x32xf32>
    %149 = vector.extract_strided_slice %3 {offsets = [0, 4, 0], sizes = [8, 4, 32], strides = [1, 1, 1]} : vector<8x8x32xf32> to vector<8x4x32xf32>
    %150 = vector.extract_strided_slice %149 {offsets = [0, 0, 0], sizes = [4, 4, 32], strides = [1, 1, 1]} : vector<8x4x32xf32> to vector<4x4x32xf32>
    %151 = vector.extract_strided_slice %5 {offsets = [0, 4, 0], sizes = [1, 1, 32], strides = [1, 1, 1]} : vector<5x5x32xf32> to vector<1x1x32xf32>
    %152 = vector.shape_cast %151 : vector<1x1x32xf32> to vector<32xf32>
    %153 = vector.shape_cast %152 : vector<32xf32> to vector<1x1x32xf32>
    %154 = vector.broadcast %153 : vector<1x1x32xf32> to vector<4x4x32xf32>
    %155 = arith.mulf %150, %154 : vector<4x4x32xf32>
    %156 = arith.addf %148, %155 : vector<4x4x32xf32>
    %157 = vector.extract_strided_slice %149 {offsets = [1, 0, 0], sizes = [4, 4, 32], strides = [1, 1, 1]} : vector<8x4x32xf32> to vector<4x4x32xf32>
    %158 = vector.extract_strided_slice %5 {offsets = [1, 4, 0], sizes = [1, 1, 32], strides = [1, 1, 1]} : vector<5x5x32xf32> to vector<1x1x32xf32>
    %159 = vector.shape_cast %158 : vector<1x1x32xf32> to vector<32xf32>
    %160 = vector.shape_cast %159 : vector<32xf32> to vector<1x1x32xf32>
    %161 = vector.broadcast %160 : vector<1x1x32xf32> to vector<4x4x32xf32>
    %162 = arith.mulf %157, %161 : vector<4x4x32xf32>
    %163 = arith.addf %156, %162 : vector<4x4x32xf32>
    %164 = vector.extract_strided_slice %149 {offsets = [2, 0, 0], sizes = [4, 4, 32], strides = [1, 1, 1]} : vector<8x4x32xf32> to vector<4x4x32xf32>
    %165 = vector.extract_strided_slice %5 {offsets = [2, 4, 0], sizes = [1, 1, 32], strides = [1, 1, 1]} : vector<5x5x32xf32> to vector<1x1x32xf32>
    %166 = vector.shape_cast %165 : vector<1x1x32xf32> to vector<32xf32>
    %167 = vector.shape_cast %166 : vector<32xf32> to vector<1x1x32xf32>
    %168 = vector.broadcast %167 : vector<1x1x32xf32> to vector<4x4x32xf32>
    %169 = arith.mulf %164, %168 : vector<4x4x32xf32>
    %170 = arith.addf %163, %169 : vector<4x4x32xf32>
    %171 = vector.extract_strided_slice %149 {offsets = [3, 0, 0], sizes = [4, 4, 32], strides = [1, 1, 1]} : vector<8x4x32xf32> to vector<4x4x32xf32>
    %172 = vector.extract_strided_slice %5 {offsets = [3, 4, 0], sizes = [1, 1, 32], strides = [1, 1, 1]} : vector<5x5x32xf32> to vector<1x1x32xf32>
    %173 = vector.shape_cast %172 : vector<1x1x32xf32> to vector<32xf32>
    %174 = vector.shape_cast %173 : vector<32xf32> to vector<1x1x32xf32>
    %175 = vector.broadcast %174 : vector<1x1x32xf32> to vector<4x4x32xf32>
    %176 = arith.mulf %171, %175 : vector<4x4x32xf32>
    %177 = arith.addf %170, %176 : vector<4x4x32xf32>
    %178 = vector.extract_strided_slice %149 {offsets = [4, 0, 0], sizes = [4, 4, 32], strides = [1, 1, 1]} : vector<8x4x32xf32> to vector<4x4x32xf32>
    %179 = vector.extract_strided_slice %5 {offsets = [4, 4, 0], sizes = [1, 1, 32], strides = [1, 1, 1]} : vector<5x5x32xf32> to vector<1x1x32xf32>
    %180 = vector.shape_cast %179 : vector<1x1x32xf32> to vector<32xf32>
    %181 = vector.shape_cast %180 : vector<32xf32> to vector<1x1x32xf32>
    %182 = vector.broadcast %181 : vector<1x1x32xf32> to vector<4x4x32xf32>
    %183 = arith.mulf %178, %182 : vector<4x4x32xf32>
    %184 = arith.addf %177, %183 : vector<4x4x32xf32>
    %c0_7 = arith.constant 0 : index
    %c0_8 = arith.constant 0 : index
    %c0_9 = arith.constant 0 : index
    %185 = vector.load %arg4[%c0_7, %c0_8, %c0_9] : memref<1x1x32xf32, #tpu.memory_space<vmem>>, vector<1x1x32xf32>
    %186 = vector.shape_cast %185 : vector<1x1x32xf32> to vector<1x32xf32>
    %187 = vector.shape_cast %186 : vector<1x32xf32> to vector<1x1x32xf32>
    %188 = vector.broadcast %187 : vector<1x1x32xf32> to vector<4x4x32xf32>
    %189 = arith.addf %184, %188 : vector<4x4x32xf32>
    %190 = vector.extract_strided_slice %3 {offsets = [2, 2, 0], sizes = [4, 4, 32], strides = [1, 1, 1]} : vector<8x8x32xf32> to vector<4x4x32xf32>
    %cst = arith.constant 5.000000e-01 : f32
    %191 = vector.broadcast %cst : f32 to vector<4x4x32xf32>
    %192 = arith.mulf %191, %189 : vector<4x4x32xf32>
    %cst_10 = arith.constant 1.41421354 : f32
    %193 = vector.broadcast %cst_10 : f32 to vector<4x4x32xf32>
    %194 = arith.divf %189, %193 : vector<4x4x32xf32>
    %195 = math.erf %194 : vector<4x4x32xf32>
    %cst_11 = arith.constant 1.000000e+00 : f32
    %196 = vector.broadcast %cst_11 : f32 to vector<4x4x32xf32>
    %197 = arith.addf %196, %195 : vector<4x4x32xf32>
    %198 = arith.mulf %192, %197 : vector<4x4x32xf32>
    %199 = arith.addf %198, %190 : vector<4x4x32xf32>
    %200 = vector.shape_cast %199 : vector<4x4x32xf32> to vector<16x32xf32>
    %201 = arith.truncf %200 : vector<16x32xf32> to vector<16x32xbf16>
    %c0_12 = arith.constant 0 : index
    %c0_13 = arith.constant 0 : index
    %c0_14 = arith.constant 0 : index
    %202 = vector.load %arg5[%c0_12, %c0_13, %c0_14] : memref<1x32x32xbf16, #tpu.memory_space<vmem>>, vector<1x32x32xbf16>
    %203 = vector.shape_cast %202 : vector<1x32x32xbf16> to vector<32x32xbf16>
    %cst_15 = arith.constant dense<0.000000e+00> : vector<16x32xf32>
    %204 = tpu.matmul %201, %203, %cst_15 {dimension_numbers = #tpu.dot_dimension_numbers<[1], [0], [0], [1], [0, 0, 1, 1], [], []>} : vector<16x32xbf16>, vector<32x32xbf16>, vector<16x32xf32> -> vector<16x32xf32>
    %c0_16 = arith.constant 0 : index
    %c0_17 = arith.constant 0 : index
    %c0_18 = arith.constant 0 : index
    %205 = vector.load %arg6[%c0_16, %c0_17, %c0_18] : memref<1x1x32xf32, #tpu.memory_space<vmem>>, vector<1x1x32xf32>
    %206 = vector.shape_cast %205 : vector<1x1x32xf32> to vector<1x32xf32>
    %207 = vector.broadcast %206 : vector<1x32xf32> to vector<16x32xf32>
    %208 = arith.addf %204, %207 : vector<16x32xf32>
    %cst_19 = arith.constant 5.000000e-01 : f32
    %209 = vector.broadcast %cst_19 : f32 to vector<16x32xf32>
    %210 = arith.mulf %209, %208 : vector<16x32xf32>
    %cst_20 = arith.constant 1.41421354 : f32
    %211 = vector.broadcast %cst_20 : f32 to vector<16x32xf32>
    %212 = arith.divf %208, %211 : vector<16x32xf32>
    %213 = math.erf %212 : vector<16x32xf32>
    %cst_21 = arith.constant 1.000000e+00 : f32
    %214 = vector.broadcast %cst_21 : f32 to vector<16x32xf32>
    %215 = arith.addf %214, %213 : vector<16x32xf32>
    %216 = arith.mulf %210, %215 : vector<16x32xf32>
    %217 = vector.shape_cast %216 : vector<16x32xf32> to vector<4x4x32xf32>
    %c2_i32 = arith.constant 2 : i32
    %218 = arith.cmpi slt, %arg1, %c2_i32 : i32
    %219 = arith.extui %218 : i1 to i32
    %c0_i32_22 = arith.constant 0 : i32
    %220 = arith.cmpi ne, %219, %c0_i32_22 : i32
    scf.if %220 {
      %c2 = arith.constant 2 : index
      %c2_25 = arith.constant 2 : index
      %c0_26 = arith.constant 0 : index
      %224 = vector.load %arg8[%c2, %c2_25, %c0_26] : memref<8x8x32xf32, #tpu.memory_space<vmem>>, vector<4x4x32xf32>
      tpu.vector_store %arg8[%c2, %c2_25, %c0_26], %217 {strides = array<i32>} : memref<8x8x32xf32, #tpu.memory_space<vmem>>, vector<4x4x32xf32>,
    } else {
    }
    %c2_i32_23 = arith.constant 2 : i32
    %221 = arith.cmpi eq, %arg1, %c2_i32_23 : i32
    %222 = arith.extui %221 : i1 to i32
    %c0_i32_24 = arith.constant 0 : i32
    %223 = arith.cmpi ne, %222, %c0_i32_24 : i32
    scf.if %223 {
      %cst_25 = arith.constant 5.000000e-01 : f32
      %224 = vector.broadcast %cst_25 : f32 to vector<4x4x32xf32>
      %225 = arith.mulf %224, %217 : vector<4x4x32xf32>
      %cst_26 = arith.constant 1.41421354 : f32
      %226 = vector.broadcast %cst_26 : f32 to vector<4x4x32xf32>
      %227 = arith.divf %217, %226 : vector<4x4x32xf32>
      %228 = math.erf %227 : vector<4x4x32xf32>
      %cst_27 = arith.constant 1.000000e+00 : f32
      %229 = vector.broadcast %cst_27 : f32 to vector<4x4x32xf32>
      %230 = arith.addf %229, %228 : vector<4x4x32xf32>
      %231 = arith.mulf %225, %230 : vector<4x4x32xf32>
      %232 = vector.shape_cast %231 : vector<4x4x32xf32> to vector<1x4x4x32xf32>
      %233 = arith.truncf %232 : vector<1x4x4x32xf32> to vector<1x4x4x32xbf16>
      %c0_28 = arith.constant 0 : index
      %c0_29 = arith.constant 0 : index
      %c0_30 = arith.constant 0 : index
      %c0_31 = arith.constant 0 : index
      %234 = vector.load %arg7[%c0_28, %c0_29, %c0_30, %c0_31] : memref<1x4x4x32xbf16, #tpu.memory_space<vmem>>, vector<1x4x4x32xbf16>
      tpu.vector_store %arg7[%c0_28, %c0_29, %c0_30, %c0_31], %233 {strides = array<i32>} : memref<1x4x4x32xbf16, #tpu.memory_space<vmem>>, vector<1x4x4x32xbf16>,
    } else {
    }
    return
  }
  func.func @transform_0(%arg0: i32, %arg1: i32) -> (i32, i32, i32, i32) {
    %c0_i32 = arith.constant 0 : i32
    %c0_i32_0 = arith.constant 0 : i32
    %c0_i32_1 = arith.constant 0 : i32
    %c0_i32_2 = arith.constant 0 : i32
    return %arg0, %c0_i32, %c0_i32_0, %c0_i32_1 : i32, i32, i32, i32
  }
  func.func @transform_1(%arg0: i32, %arg1: i32) -> (i32, i32, i32, i32) {
    %c0_i32 = arith.constant 0 : i32
    %c0_i32_0 = arith.constant 0 : i32
    %c0_i32_1 = arith.constant 0 : i32
    %c0_i32_2 = arith.constant 0 : i32
    return %arg1, %c0_i32, %c0_i32_0, %c0_i32_1 : i32, i32, i32, i32
  }
  func.func @transform_2(%arg0: i32, %arg1: i32) -> (i32, i32, i32) {
    %c0_i32 = arith.constant 0 : i32
    %c0_i32_0 = arith.constant 0 : i32
    %c0_i32_1 = arith.constant 0 : i32
    return %arg1, %c0_i32, %c0_i32_0 : i32, i32, i32
  }
  func.func @transform_3(%arg0: i32, %arg1: i32) -> (i32, i32, i32) {
    %c0_i32 = arith.constant 0 : i32
    %c0_i32_0 = arith.constant 0 : i32
    %c0_i32_1 = arith.constant 0 : i32
    return %arg1, %c0_i32, %c0_i32_0 : i32, i32, i32
  }
  func.func @transform_4(%arg0: i32, %arg1: i32) -> (i32, i32, i32) {
    %c0_i32 = arith.constant 0 : i32
    %c0_i32_0 = arith.constant 0 : i32
    %c0_i32_1 = arith.constant 0 : i32
    return %arg1, %c0_i32, %c0_i32_0 : i32, i32, i32
  }
  func.func @transform_5(%arg0: i32, %arg1: i32) -> (i32, i32, i32, i32) {
    %c0_i32 = arith.constant 0 : i32
    %c0_i32_0 = arith.constant 0 : i32
    %c0_i32_1 = arith.constant 0 : i32
    %c0_i32_2 = arith.constant 0 : i32
    return %arg0, %c0_i32, %c0_i32_0, %c0_i32_1 : i32, i32, i32, i32
  }
}

module attributes {stable_mosaic.version = 11 : i64} {
  func.func @_tail_kernel(%arg0: i32, %arg1: memref<1x4x4x32xbf16, #tpu.memory_space<vmem>>, %arg2: memref<288x16xbf16, #tpu.memory_space<vmem>>, %arg3: memref<1x16xf32, #tpu.memory_space<vmem>>, %arg4: memref<16x16xbf16, #tpu.memory_space<vmem>>, %arg5: memref<1x16xf32, #tpu.memory_space<vmem>>, %arg6: memref<1x1x16xf32, #tpu.memory_space<vmem>>, %arg7: memref<1x1x16xf32, #tpu.memory_space<vmem>>, %arg8: memref<6x6x32xf32, #tpu.memory_space<vmem>>) attributes {dimension_semantics = [#tpu.dimension_semantics<parallel>], iteration_bounds = array<i64: 2>, scalar_prefetch = 0 : i64, scratch_operands = 1 : i64, tpu.core_type = #tpu.core_type<tc>, window_params = [{transform_indices = @transform_0, window_bounds = array<i64: 1, 4, 4, 32>}, {pipeline_mode = #tpu.pipeline_mode<synchronous>, transform_indices = @transform_1, window_bounds = array<i64: 288, 16>}, {pipeline_mode = #tpu.pipeline_mode<synchronous>, transform_indices = @transform_2, window_bounds = array<i64: 1, 16>}, {pipeline_mode = #tpu.pipeline_mode<synchronous>, transform_indices = @transform_3, window_bounds = array<i64: 16, 16>}, {pipeline_mode = #tpu.pipeline_mode<synchronous>, transform_indices = @transform_4, window_bounds = array<i64: 1, 16>}, {transform_indices = @transform_5, window_bounds = array<i64: 1, 1, 16>}, {transform_indices = @transform_6, window_bounds = array<i64: 1, 1, 16>}]} {
    %cst = arith.constant 0.000000e+00 : f32
    %0 = vector.broadcast %cst : f32 to vector<6x6x32xf32>
    %c0 = arith.constant 0 : index
    %c0_0 = arith.constant 0 : index
    %c0_1 = arith.constant 0 : index
    %1 = vector.load %arg8[%c0, %c0_0, %c0_1] : memref<6x6x32xf32, #tpu.memory_space<vmem>>, vector<6x6x32xf32>
    tpu.vector_store %arg8[%c0, %c0_0, %c0_1], %0 {strides = array<i32>} : memref<6x6x32xf32, #tpu.memory_space<vmem>>, vector<6x6x32xf32>,
    %c0_2 = arith.constant 0 : index
    %c0_3 = arith.constant 0 : index
    %c0_4 = arith.constant 0 : index
    %c0_5 = arith.constant 0 : index
    %2 = vector.load %arg1[%c0_2, %c0_3, %c0_4, %c0_5] : memref<1x4x4x32xbf16, #tpu.memory_space<vmem>>, vector<1x4x4x32xbf16>
    %3 = vector.shape_cast %2 : vector<1x4x4x32xbf16> to vector<4x4x32xbf16>
    %4 = arith.extf %3 : vector<4x4x32xbf16> to vector<4x4x32xf32>
    %c1 = arith.constant 1 : index
    %c1_6 = arith.constant 1 : index
    %c0_7 = arith.constant 0 : index
    %5 = vector.load %arg8[%c1, %c1_6, %c0_7] : memref<6x6x32xf32, #tpu.memory_space<vmem>>, vector<4x4x32xf32>
    tpu.vector_store %arg8[%c1, %c1_6, %c0_7], %4 {strides = array<i32>} : memref<6x6x32xf32, #tpu.memory_space<vmem>>, vector<4x4x32xf32>,
    %c0_8 = arith.constant 0 : index
    %c0_9 = arith.constant 0 : index
    %c0_10 = arith.constant 0 : index
    %6 = vector.load %arg8[%c0_8, %c0_9, %c0_10] : memref<6x6x32xf32, #tpu.memory_space<vmem>>, vector<6x6x32xf32>
    %7 = vector.extract_strided_slice %6 {offsets = [0, 0, 0], sizes = [4, 4, 32], strides = [1, 1, 1]} : vector<6x6x32xf32> to vector<4x4x32xf32>
    %8 = vector.extract_strided_slice %6 {offsets = [0, 1, 0], sizes = [4, 4, 32], strides = [1, 1, 1]} : vector<6x6x32xf32> to vector<4x4x32xf32>
    %9 = vector.extract_strided_slice %6 {offsets = [0, 2, 0], sizes = [4, 4, 32], strides = [1, 1, 1]} : vector<6x6x32xf32> to vector<4x4x32xf32>
    %10 = vector.extract_strided_slice %6 {offsets = [1, 0, 0], sizes = [4, 4, 32], strides = [1, 1, 1]} : vector<6x6x32xf32> to vector<4x4x32xf32>
    %11 = vector.extract_strided_slice %6 {offsets = [1, 1, 0], sizes = [4, 4, 32], strides = [1, 1, 1]} : vector<6x6x32xf32> to vector<4x4x32xf32>
    %12 = vector.extract_strided_slice %6 {offsets = [1, 2, 0], sizes = [4, 4, 32], strides = [1, 1, 1]} : vector<6x6x32xf32> to vector<4x4x32xf32>
    %13 = vector.extract_strided_slice %6 {offsets = [2, 0, 0], sizes = [4, 4, 32], strides = [1, 1, 1]} : vector<6x6x32xf32> to vector<4x4x32xf32>
    %14 = vector.extract_strided_slice %6 {offsets = [2, 1, 0], sizes = [4, 4, 32], strides = [1, 1, 1]} : vector<6x6x32xf32> to vector<4x4x32xf32>
    %15 = vector.extract_strided_slice %6 {offsets = [2, 2, 0], sizes = [4, 4, 32], strides = [1, 1, 1]} : vector<6x6x32xf32> to vector<4x4x32xf32>
    %16 = tpu.concatenate %7, %8, %9, %10, %11, %12, %13, %14, %15 in 2 : vector<4x4x32xf32>, vector<4x4x32xf32>, vector<4x4x32xf32>, vector<4x4x32xf32>, vector<4x4x32xf32>, vector<4x4x32xf32>, vector<4x4x32xf32>, vector<4x4x32xf32>, vector<4x4x32xf32> -> vector<4x4x288xf32>
    %17 = vector.shape_cast %16 : vector<4x4x288xf32> to vector<16x288xf32>
    %18 = arith.truncf %17 : vector<16x288xf32> to vector<16x288xbf16>
    %c0_11 = arith.constant 0 : index
    %c0_12 = arith.constant 0 : index
    %19 = vector.load %arg2[%c0_11, %c0_12] : memref<288x16xbf16, #tpu.memory_space<vmem>>, vector<288x16xbf16>
    %cst_13 = arith.constant dense<0.000000e+00> : vector<16x16xf32>
    %20 = tpu.matmul %18, %19, %cst_13 {dimension_numbers = #tpu.dot_dimension_numbers<[1], [0], [0], [1], [0, 0, 1, 1], [], []>} : vector<16x288xbf16>, vector<288x16xbf16>, vector<16x16xf32> -> vector<16x16xf32>
    %c0_14 = arith.constant 0 : index
    %c0_15 = arith.constant 0 : index
    %21 = vector.load %arg3[%c0_14, %c0_15] : memref<1x16xf32, #tpu.memory_space<vmem>>, vector<1x16xf32>
    %22 = vector.broadcast %21 : vector<1x16xf32> to vector<16x16xf32>
    %23 = arith.addf %20, %22 : vector<16x16xf32>
    %cst_16 = arith.constant 5.000000e-01 : f32
    %24 = vector.broadcast %cst_16 : f32 to vector<16x16xf32>
    %25 = arith.mulf %24, %23 : vector<16x16xf32>
    %cst_17 = arith.constant 1.41421354 : f32
    %26 = vector.broadcast %cst_17 : f32 to vector<16x16xf32>
    %27 = arith.divf %23, %26 : vector<16x16xf32>
    %28 = math.erf %27 : vector<16x16xf32>
    %cst_18 = arith.constant 1.000000e+00 : f32
    %29 = vector.broadcast %cst_18 : f32 to vector<16x16xf32>
    %30 = arith.addf %29, %28 : vector<16x16xf32>
    %31 = arith.mulf %25, %30 : vector<16x16xf32>
    %cst_19 = arith.constant dense<0.000000e+00> : vector<16xf32>
    %32 = vector.multi_reduction <add>, %31, %cst_19 [0] : vector<16x16xf32> to vector<16xf32>
    %33 = vector.shape_cast %32 : vector<16xf32> to vector<1x16xf32>
    %cst_20 = arith.constant 1.600000e+01 : f32
    %34 = vector.broadcast %cst_20 : f32 to vector<1x16xf32>
    %35 = arith.divf %33, %34 : vector<1x16xf32>
    %36 = vector.shape_cast %35 : vector<1x16xf32> to vector<1x1x16xf32>
    %c0_21 = arith.constant 0 : index
    %c0_22 = arith.constant 0 : index
    %c0_23 = arith.constant 0 : index
    %37 = vector.load %arg6[%c0_21, %c0_22, %c0_23] : memref<1x1x16xf32, #tpu.memory_space<vmem>>, vector<1x1x16xf32>
    tpu.vector_store %arg6[%c0_21, %c0_22, %c0_23], %36 {strides = array<i32>} : memref<1x1x16xf32, #tpu.memory_space<vmem>>, vector<1x1x16xf32>,
    %38 = arith.truncf %35 : vector<1x16xf32> to vector<1x16xbf16>
    %c0_24 = arith.constant 0 : index
    %c0_25 = arith.constant 0 : index
    %39 = vector.load %arg4[%c0_24, %c0_25] : memref<16x16xbf16, #tpu.memory_space<vmem>>, vector<16x16xbf16>
    %cst_26 = arith.constant dense<0.000000e+00> : vector<1x16xf32>
    %40 = tpu.matmul %38, %39, %cst_26 {dimension_numbers = #tpu.dot_dimension_numbers<[1], [0], [0], [1], [0, 0, 1, 1], [], []>} : vector<1x16xbf16>, vector<16x16xbf16>, vector<1x16xf32> -> vector<1x16xf32>
    %c0_27 = arith.constant 0 : index
    %c0_28 = arith.constant 0 : index
    %41 = vector.load %arg5[%c0_27, %c0_28] : memref<1x16xf32, #tpu.memory_space<vmem>>, vector<1x16xf32>
    %42 = arith.addf %40, %41 : vector<1x16xf32>
    %43 = vector.shape_cast %42 : vector<1x16xf32> to vector<1x1x16xf32>
    %c0_29 = arith.constant 0 : index
    %c0_30 = arith.constant 0 : index
    %c0_31 = arith.constant 0 : index
    %44 = vector.load %arg7[%c0_29, %c0_30, %c0_31] : memref<1x1x16xf32, #tpu.memory_space<vmem>>, vector<1x1x16xf32>
    tpu.vector_store %arg7[%c0_29, %c0_30, %c0_31], %43 {strides = array<i32>} : memref<1x1x16xf32, #tpu.memory_space<vmem>>, vector<1x1x16xf32>,
    return
  }
  func.func @transform_0(%arg0: i32) -> (i32, i32, i32, i32) {
    %c0_i32 = arith.constant 0 : i32
    %c0_i32_0 = arith.constant 0 : i32
    %c0_i32_1 = arith.constant 0 : i32
    %c0_i32_2 = arith.constant 0 : i32
    return %arg0, %c0_i32, %c0_i32_0, %c0_i32_1 : i32, i32, i32, i32
  }
  func.func @transform_1(%arg0: i32) -> (i32, i32) {
    %c0_i32 = arith.constant 0 : i32
    %c0_i32_0 = arith.constant 0 : i32
    %c0_i32_1 = arith.constant 0 : i32
    return %c0_i32, %c0_i32_0 : i32, i32
  }
  func.func @transform_2(%arg0: i32) -> (i32, i32) {
    %c0_i32 = arith.constant 0 : i32
    %c0_i32_0 = arith.constant 0 : i32
    %c0_i32_1 = arith.constant 0 : i32
    return %c0_i32, %c0_i32_0 : i32, i32
  }
  func.func @transform_3(%arg0: i32) -> (i32, i32) {
    %c0_i32 = arith.constant 0 : i32
    %c0_i32_0 = arith.constant 0 : i32
    %c0_i32_1 = arith.constant 0 : i32
    return %c0_i32, %c0_i32_0 : i32, i32
  }
  func.func @transform_4(%arg0: i32) -> (i32, i32) {
    %c0_i32 = arith.constant 0 : i32
    %c0_i32_0 = arith.constant 0 : i32
    %c0_i32_1 = arith.constant 0 : i32
    return %c0_i32, %c0_i32_0 : i32, i32
  }
  func.func @transform_5(%arg0: i32) -> (i32, i32, i32) {
    %c0_i32 = arith.constant 0 : i32
    %c0_i32_0 = arith.constant 0 : i32
    %c0_i32_1 = arith.constant 0 : i32
    return %arg0, %c0_i32, %c0_i32_0 : i32, i32, i32
  }
  func.func @transform_6(%arg0: i32) -> (i32, i32, i32) {
    %c0_i32 = arith.constant 0 : i32
    %c0_i32_0 = arith.constant 0 : i32
    %c0_i32_1 = arith.constant 0 : i32
    return %arg0, %c0_i32, %c0_i32_0 : i32, i32, i32
  }
}

</mosaic_0001>

<bundles_post_ra>
// kernel: conv_mixer_forward.3
= control target key start
LH: loop header
LB: loop body
LE: loop exit
PB: predicated region body
PF: predicated region fallthrough
CT: control target
= control target key end

     0   :  { %vm52_vm0 = vcmask 392192   ;;  %vm145_vm1 = vcmask 257024   ;;  %s254_s1 = inlined_call_operand.vmem [shape: bf16[48,32], index: 1, kind: input, shape index: {}]   ;;  %s255_s0 = inlined_call_operand.vmem [shape: f32[32,48], index: 0, kind: input, shape index: {}]   ;;  %s256_s2 = inlined_call_operand.vmem [shape: f32[1,32], index: 2, kind: input, shape index: {}]   ;;  %s257_s3 = inlined_call_operand.vmem [shape: bf16[32,32], index: 3, kind: output, shape index: {}]  }
   0x1   :  { %v183_v0 = vld [vmem:[%s254_s1 + $0x10] sm:$0xff]   ;;  %v184_v1 = vld [vmem:[%s254_s1 + $0x8] sm:$0xff]   ;;  %v15_v2 = vld [vmem:[%s255_s0] sm:$0xff] }
   0x2   :  { %173 = vmatprep.subr.bf16.mxu0 %v183_v0  ;;  %v16_v3 = vld [vmem:[%s255_s0 + $0x8] sm:$0xff]  ;;  %v185_v4 = vld [vmem:[%s254_s1] sm:$0xff]   ;;  %v17_v6 = vld [vmem:[%s255_s0 + $0x10] sm:$0xff] }
   0x3   :  { %174 = vmatpush3.bf16.msra.mxu0 %v183_v0  ;;  %v19_v5 = vpack.c.bf16 %v16_v3, %v15_v2  ;;  %v18_v7 = vld [vmem:[%s255_s0 + $0x18] sm:$0xff]  ;;  %v154_v9 = vld [vmem:[%s256_s2] ss:$0 sm:$0xff] }
   0x4   :  { %175 = vmatprep.subr.bf16.mxu0 %v184_v1  ;;  %v20_v8 = vpack.c.bf16 %v18_v7, %v17_v6 }
   0x5   :  { %179 = vmatprep.mubr.msk.bf16.mxu0 %vm52_vm0, %v19_v5 }
   0x7   :  { %176 = vmatpush3.bf16.msra.mxu0 %v184_v1 }
   0x8   :  { %177 = vmatprep.subr.bf16.mxu0 %v185_v4 }
   0xb   :  { %178 = vmatpush3.bf16.msra.mxu0 %v185_v4 }
   0xe   :  { %180 = vmatmul.mubr.msk.bf16.vlgmr.msra.gmra.mxu0 %vm52_vm0, %v20_v8 }
  0xce   :  { %v181_v10 = vpop.f32.mrf.mxu0 }
  0xcf   :  { %v102_v11 = vadd.f32 %v181_v10, %v154_v9 }
  0xd0   :  { %v93_v12 = vpop.f32.mrf.mxu0 }
  0xd1   :  { %v115_v13 = vmul.f32 0.70710677, %v102_v11  ;;  %v94_v14 = vadd.f32 %v154_v9, %v93_v12  ;;  %v110_v23 = vmul.f32 0.5, %v102_v11 }
  0xd2   :  { %v182_v15 = vpop.f32.mrf.mxu0 }
  0xd3   :  { %186 = verf.f32 %v115_v13  ;;  %v113_v16 = vmul.f32 0.70710677, %v94_v14  ;;  %v105_v17 = vadd.f32 %v182_v15, %v154_v9  ;;  %v108_v27 = vmul.f32 0.5, %v94_v14 }
  0xd4   :  { %v96_v18 = vpop.f32.mrf.mxu0 }
  0xd5   :  { %188 = verf.f32 %v113_v16  ;;  %v116_v19 = vmul.f32 0.70710677, %v105_v17  ;;  %v97_v20 = vadd.f32 %v154_v9, %v96_v18  ;;  %v111_v32 = vmul.f32 0.5, %v105_v17 }
  0xd7   :  { %190 = verf.f32 %v116_v19  ;;  %v114_v21 = vmul.f32 0.70710677, %v97_v20  ;;  %v109_v37 = vmul.f32 0.5, %v97_v20 }
  0xd9   :  { %192 = verf.f32 %v114_v21 }
  0xe0   :  { %v187_v22 = vpop.eup %186 }
  0xe1   :  { %v123_v24 = vadd.f32 1.0, %v187_v22 }
  0xe2   :  { %v189_v25 = vpop.eup %188 }
  0xe3   :  { %v127_v26 = vmul.f32 %v123_v24, %v110_v23  ;;  %v121_v28 = vadd.f32 1.0, %v189_v25 }
  0xe4   :  { %v191_v29 = vpop.eup %190 }
  0xe5   :  { %v166_v30 = vpack.c.bf16 %v127_v26, %v127_v26  ;;  %v125_v31 = vmul.f32 %v121_v28, %v108_v27  ;;  %v124_v33 = vadd.f32 1.0, %v191_v29 }
  0xe6   :  { %v193_v34 = vpop.eup %192 }
  0xe7   :  { %148 = vst.msk [vmem:[%s257_s3 + $0x8] sm:$0xf] %vm145_vm1, %v166_v30  ;;  %v164_v35 = vpack.c.bf16 %v125_v31, %v125_v31  ;;  %v128_v36 = vmul.f32 %v124_v33, %v111_v32  ;;  %v122_v38 = vadd.f32 1.0, %v193_v34 }
  0xe9   :  { %146 = vst.msk [vmem:[%s257_s3] sm:$0xf] %vm145_vm1, %v164_v35  ;;  %v167_v39 = vpack.c.bf16 %v128_v36, %v128_v36  ;;  %v126_v40 = vmul.f32 %v122_v38, %v109_v37 }
  0xeb   :  { %149 = vst.msk [vmem:[%s257_s3 + $0xc] sm:$0xf] %vm145_vm1, %v167_v39  ;;  %v165_v41 = vpack.c.bf16 %v126_v40, %v126_v40 }
  0xed   :  { %147 = vst.msk [vmem:[%s257_s3 + $0x4] sm:$0xf] %vm145_vm1, %v165_v41 }

// kernel: conv_mixer_forward.5
= control target key start
LH: loop header
LB: loop body
LE: loop exit
PB: predicated region body
PF: predicated region fallthrough
CT: control target
= control target key end

     0   :  { %12 = vsyncpa [#allocation4], 0  ;;  %s1446_s0 = inlined_call_operand.vmem [shape: bf16[2,4,4,32], index: 0, kind: input, shape index: {}]   ;;  %s1447_s1 = inlined_call_operand.vmem [shape: bf16[288,16], index: 1, kind: input, shape index: {}]   ;;  %s1448_s2 = inlined_call_operand.vmem [shape: f32[1,16], index: 2, kind: input, shape index: {}]   ;;  %s1449_s3 = inlined_call_operand.vmem [shape: bf16[16,16], index: 3, kind: input, shape index: {}]   ;;  %s1450_s4 = inlined_call_operand.vmem [shape: f32[1,16], index: 4, kind: input, shape index: {}]   ;;  %s1451_s5 = inlined_call_operand.hbm [shape: f32[2,1,16], index: 5, kind: output, shape index: {0}]   ;;  %s1452_s6 = inlined_call_operand.hbm [shape: f32[2,1,16], index: 6, kind: output, shape index: {1}]  }
   0x1   :  { %14 = vsyncpa [#allocation4 + $0x1], 0 }
   0x2   :  { %15 = vsyncpa [#allocation6], 0 }
   0x3   :  { %17 = vsyncpa [#allocation6 + $0x1], 0  ;;  %s1147_s21 = smov 0   ;;  %s1149_s22 = smov 0  }
   0x4   :  { %s1151_s23 = smov 0   ;;  %s1153_s24 = smov 0  }
   0x5 LB: > { %s1168_s25 = sadd.s32 4294967295, %s1103_s24   ;;  %s863_s26 = sadd.s32 4294967294, %s1103_s24   ;;  %s1103_s24 = sphi %s1153_s24, %s1458_s24   ;;  %s1099_s23 = sphi %s1151_s23, %s1457_s23   ;;  %s1095_s22 = sphi %s1149_s22, %s1456_s22   ;;  %s1091_s21 = sphi %s1147_s21, %s1455_s21  }
   0x6   : > { %s1172_s27 = sadd.s32 1, %s1103_s24   ;;  %s140_s28 = sadd.s32 1, %s1099_s23 }
   0x7   : > { %s137_s29 = ssub.s32 %s1103_s24, %s1172_s27  ;;  %p150_p0 = scmp.ne.s32.totalorder %s1099_s23, %s1095_s22 }
   0x8   : > { %p138_p1 = scmp.eq.s32.totalorder %s137_s29, 0  ;;  %p151_p2 = scmp.eq.s32.totalorder %s1168_s25, 1 }
   0x9   : > { %p156_p3 = scmp.ne.s32.totalorder %s1095_s22, %s1091_s21  ;;  %p157_p4 = scmp.eq.s32.totalorder %s863_s26, 1 }
   0xa   : > { %s1183_s30 = scalar_select %p138_p1, %s1099_s23, %s140_s28  }
   0xb   : > { %p1185_p5 = por %p151_p2, %p150_p0  ;;  %p1189_p6 = por %p157_p4, %p156_p3 }
   0xc   : > { %p866_p7 = scmp.ge.s32.totalorder %s1103_s24, 1  ;;  %p221_p8 = scmp.lt.s32.totalorder %s1103_s24, 3 }
   0xe   : > { %p222_p9 = pnand %p866_p7, %p221_p8 }
   0xf   : > { %p254_p10 = scmp.lt.s32.totalorder (!%p222_p9), %s1168_s25, 1  ;;  %s1106_s14 = smov (!%p222_p9), 32  }
  0x10   : > { %225 = sbr.rel (%p222_p9) target bundleno = 653 (0x28d), region = 40  ;;  %s1107_s15 = smov (!%p222_p9), 64  }
  0x11   : > { %s1108_s19 = smov (!%p222_p9), 96   ;;  %s895_s17 = sshll.u32 (!%p222_p9), %s1168_s25, 4 }
  0x12   : > { %s765_s26 = scalar_lea.hbm (!%p222_p9), %s1451_s5, %s895_s17 }
  0x15   : > { %vm260_vm0 = vcmask 259072   ;;  %v1105_v0 = vmov 0.0   ;;  %s255_s9 = scalar_select %p254_p10, %s1168_s25, 1  ;;  %vm276_vm1 = vcmask 257024   ;;  %v990_v17 = vld [vmem:[%s1447_s1 + $0x78] sm:$0xff]   ;;  %v992_v21 = vld [vmem:[%s1447_s1 + $0x70] sm:$0xff]  }
  0x16   : > { %261 = vst.msk [vmem:[#allocation2] sm:$0x3f] %vm260_vm0, %v1105_v0  ;;  %262 = vst.msk [vmem:[#allocation2 + $0x8] sm:$0x3f] %vm260_vm0, %v1105_v0  ;;  %927 = vmatprep.subr.bf16.mxu1 %v1105_v0  ;;  %v991_v18 = vld [vmem:[%s1447_s1 + $0x38] sm:$0xff]   ;;  %900 = vmatprep.subr.bf16.mxu0 %v990_v17  ;;  %v993_v22 = vld [vmem:[%s1447_s1 + $0x30] sm:$0xff]  }
  0x17   : > { %263 = vst.msk [vmem:[#allocation2 + $0x10] sm:$0x3f] %vm260_vm0, %v1105_v0  ;;  %264 = vst.msk [vmem:[#allocation2 + $0x18] sm:$0x3f] %vm260_vm0, %v1105_v0  ;;  %s899_s10 = sshll.u32 %s255_s9, 3  ;;  %901 = vmatpush3.bf16.msra.mxu0 %v991_v18  ;;  %v994_v25 = vld [vmem:[%s1447_s1 + $0x68] sm:$0xff]  }
  0x18   : > { %265 = vst.msk [vmem:[#allocation2 + $0x20] sm:$0x3f] %vm260_vm0, %v1105_v0  ;;  %266 = vst.msk [vmem:[#allocation2 + $0x28] sm:$0x3f] %vm260_vm0, %v1105_v0  ;;  %s258_s13 = scalar_lea.vmem %s1446_s0, %s899_s10  ;;  %902 = vmatprep.subr.bf16.mxu0 %v992_v21  ;;  %v995_v26 = vld [vmem:[%s1447_s1 + $0x28] sm:$0xff]   ;;  %v996_v28 = vld [vmem:[%s1447_s1 + $0x60] sm:$0xff]  }
  0x19   : > { %v269_v1 = vld [vmem:[%s258_s13 + $0x4] sm:$0x3]  ;;  %v268_v2 = vld [vmem:[%s258_s13 + $0x2] sm:$0x3]  ;;  %v267_v3 = vld [vmem:[%s258_s13] sm:$0x3] }
  0x1a   : > { %v273_v4 = vunpack.c.l.bf16 %v269_v1  ;;  %v272_v5 = vunpack.c.l.bf16 %v268_v2  ;;  %v271_v6 = vunpack.c.l.bf16 %v267_v3  ;;  %v270_v7 = vld [vmem:[%s258_s13 + $0x6] sm:$0x3]  ;;  %v998_v32 = vld [vmem:[%s1447_s1 + $0x58] sm:$0xff]   ;;  %v1000_v34 = vld [vmem:[%s1447_s1 + $0x50] sm:$0xff]   ;;  %vm1109_vm2 = vmmov 0   ;;  %s1370_s13 = sand.u32 1, %s1095_s22  }
  0x1b   : > { %v274_v9 = vunpack.c.l.bf16 %v270_v7  ;;  %903 = vmatpush3.bf16.msra.mxu0 %v993_v22  ;;  %v997_v29 = vld [vmem:[%s1447_s1 + $0x20] sm:$0xff]   ;;  %v999_v33 = vld [vmem:[%s1447_s1 + $0x18] sm:$0xff]   ;;  %v1001_v35 = vld [vmem:[%s1447_s1 + $0x10] sm:$0xff]   ;;  %931 = vmatprep.mubr.msk.bf16.mxu1 %vm1109_vm2, %v1105_v0  ;;  %vm381_vm3 = vcmask 261120   ;;  %vm386_vm4 = vcmask 523264   ;;  %vm391_vm5 = vcmask 785408  }
  0x1c   : > { %279 = vst.msk [vmem:[#allocation2 + $0x19] sm:$0xf] %vm276_vm1, %v273_v4  ;;  %278 = vst.msk [vmem:[#allocation2 + $0x11] sm:$0xf] %vm276_vm1, %v272_v5  ;;  %904 = vmatprep.subr.bf16.mxu0 %v994_v25  ;;  %v1002_v37 = vld [vmem:[%s1447_s1 + $0x48] sm:$0xff]   ;;  %v1005_v43 = vld [vmem:[%s1447_s1 + $0x40] sm:$0xff]  }
  0x1d   : > { %v1207_v8 = vld [vmem:[#allocation2] sm:$0x3f]  ;;  %277 = vst.msk [vmem:[#allocation2 + $0x9] sm:$0xf] %vm276_vm1, %v271_v6  ;;  %280 = vst.msk [vmem:[#allocation2 + $0x21] sm:$0xf] %vm276_vm1, %v274_v9 }
  0x1e   : > { %v291_v10 = vrot.slane %v1207_v8, 1  ;;  %v307_v30 = vrot.slane %v1207_v8, 2  ;;  %v1003_v38 = vld [vmem:[%s1447_s1 + $0x8] sm:$0xff]   ;;  %v1006_v44 = vld [vmem:[%s1447_s1] sm:$0xff]   ;;  %vm682_vm6 = vcmask 130048   ;;  %vm694_vm7 = vcmask 122880  }
  0x1f   : > { %905 = vmatpush3.bf16.msra.mxu0 %v995_v26  ;;  %v286_v31 = vld [vmem:[#allocation2 + $0x28] sm:$0x3f]  ;;  %v1007_v45 = vld [vmem:[%s1447_s1 + $0x80] sm:$0xff]   ;;  %s247_s16 = scalar_lea.vmem [#allocation3], %s1370_s13  ;;  %s751_s28 = scalar_lea.sflag [#allocation4], %s1370_s13 }
  0x20   : > { %295 = vrot.lane.b32.xlu0 %v291_v10, %s1106_s14  ;;  %906 = vmatprep.subr.bf16.mxu0 %v996_v28  ;;  %v380_v36 = vrot.slane %v286_v31, 2  ;;  %v1004_v39 = vld [vmem:[%s1447_s1 + $0x88] sm:$0xff]   ;;  %v367_v46 = vrot.slane %v286_v31, 1  ;;  %s767_s18 = sshll.u32 %s247_s16, 4  ;;  %s768_s18 = int_to_ptr.vmem [resolvable:$true] %s767_s18 }
  0x21   : > { %928 = vmatpush3.bf16.msra.mxu1 %v1004_v39 }
  0x22   : > { %929 = vmatprep.subr.bf16.mxu1 %v1105_v0 }
  0x23   : > { %v1211_v11 = vld [vmem:[#allocation2 + $0x18] sm:$0x3f]  ;;  %v1213_v12 = vld [vmem:[#allocation2 + $0x10] sm:$0x3f]  ;;  %907 = vmatpush3.bf16.msra.mxu0 %v997_v29 }
  0x24   : > { %v1215_v13 = vld [vmem:[#allocation2 + $0x8] sm:$0x3f]  ;;  %357 = vrot.lane.b32.xlu1 %v1211_v11, %s1107_s15  ;;  %355 = vrot.lane.b32.xlu0 %v1213_v12, %s1107_s15  ;;  %v1222_v14 = vrot.slane %v1211_v11, 2  ;;  %v1225_v16 = vld [vmem:[#allocation2 + $0x20] sm:$0x3f]  ;;  %v1238_v20 = vrot.slane %v1213_v12, 2 }
  0x25   : > { %v308_v15 = vrot.slane %v1215_v13, 2  ;;  %v341_v19 = vrot.slane %v1225_v16, 2  ;;  %v1250_v23 = vrot.slane %v1213_v12, 1  ;;  %v292_v24 = vrot.slane %v1215_v13, 1  ;;  %908 = vmatprep.subr.bf16.mxu0 %v998_v32  ;;  %930 = vmatpush3.bf16.msra.mxu1 %v1007_v45 }
  0x26   : > { %v1265_v27 = vrot.slane %v1211_v11, 1  ;;  %v336_v40 = vrot.slane %v1225_v16, 1  ;;  %v422_v41 = vcombine.low %v1238_v20, %v1222_v14  ;;  %935 = vmatprep.subr.bf16.mxu1 %v1105_v0 }
  0x27   : > { %909 = vmatpush3.bf16.msra.mxu0 %v999_v33  ;;  %v425_v42 = vcombine.low %v341_v19, %v380_v36 }
  0x28   : > { %346 = vrot.lane.b32.xlu1 %v1222_v14, %s1106_s14  ;;  %342 = vrot.lane.b32.xlu0 %v308_v15, %s1106_s14 }
  0x29   : > { %910 = vmatprep.subr.bf16.mxu0 %v1000_v34  ;;  %v434_v47 = vpack.c.bf16 %v425_v42, %v422_v41  ;;  %v1008_v42 = vld [vmem:[%s1449_s3] sm:$0xff]  }
  0x2b   : > { %911 = vmatpush3.bf16.msra.mxu0 %v1001_v35  ;;  %932 = vmatmul.mubr.msk.bf16.vlgmr.msra.gmra.mxu1 %vm381_vm3, %v434_v47 }
  0x2c   : > { %348 = vrot.lane.b32.xlu1 %v341_v19, %s1106_s14  ;;  %344 = vrot.lane.b32.xlu0 %v1238_v20, %s1106_s14 }
  0x2d   : > { %912 = vmatprep.subr.bf16.mxu0 %v1002_v37  ;;  %937 = vmatprep.mubr.msk.bf16.mxu1 %vm1109_vm2, %v1105_v0 }
  0x2e   : > { %936 = vmatpush3.bf16.msra.mxu1 %v1008_v42 }
  0x2f   : > { %913 = vmatpush3.bf16.msra.mxu0 %v1003_v38 }
  0x30   : > { %299 = vrot.lane.b32.xlu0 %v1250_v23, %s1106_s14  ;;  %297 = vrot.lane.b32.xlu1 %v292_v24, %s1106_s14 }
  0x31   : > { %914 = vmatprep.subr.bf16.mxu0 %v1005_v43 }
  0x33   : > { %915 = vmatpush3.bf16.msra.mxu0 %v1006_v44  ;;  %v873_v44 = vld [vmem:[%s1448_s2] ss:$0 sm:$0xff] }
  0x34   : > { %359 = vrot.lane.b32.xlu0 %v1225_v16, %s1107_s15  ;;  %301 = vrot.lane.b32.xlu1 %v1265_v27, %s1106_s14  ;;  %s1013_s14 = scalar_lea.vmem %s768_s18, 16 }
  0x35   : > { %p1014_p11 = scmp.ne.s32.totalorder %s768_s18, %s1013_s14 }
  0x37   : > { %p1015_p12 = pnand %p1014_p11, %p1185_p5 }
  0x38   : > { %311 = vrot.lane.b32.xlu0 %v307_v30, %s1107_s15  ;;  %361 = vrot.lane.b32.xlu1 %v286_v31, %s1107_s15 }
  0x39   : > { %p1016_p13 = pneg %p1015_p12 }
  0x3c   : > { %315 = vrot.lane.b32.xlu0 %v1238_v20, %s1107_s15  ;;  %313 = vrot.lane.b32.xlu1 %v308_v15, %s1107_s15 }
  0x40   : > { %368 = vrot.lane.b32.xlu0 %v1250_v23, %s1108_s19  ;;  %317 = vrot.lane.b32.xlu1 %v1222_v14, %s1107_s15  ;;  %s1110_s15 = smov [#allocation3]  }
  0x41   : > { %s1017_s29 = sshll.u32 %s1110_s15, 4  ;;  %s1018_s29 = int_to_ptr.vmem [resolvable:$false] %s1017_s29 }
  0x42   : > { %s1019_s9 = scalar_lea.vmem %s1018_s29, 32  ;;  %p1020_p0 = scmp.lt.s32.totalorder %s768_s18, %s1018_s29 }
  0x43   : > { %p1021_p1 = scmp.lt.s32.totalorder %s1019_s9, %s1013_s14 }
  0x44   : > { %372 = vrot.lane.b32.xlu0 %v336_v40, %s1108_s19  ;;  %370 = vrot.lane.b32.xlu1 %v1265_v27, %s1108_s19 }
  0x45   : > { %p1022_p2 = por %p1021_p1, %p1020_p0 }
  0x47   : > { %p1023_p3 = pnand %p1022_p2, %p1016_p13 }
  0x48   : > { %324 = vrot.lane.b32.xlu0 %v1215_v13, %s1108_s19  ;;  %374 = vrot.lane.b32.xlu1 %v367_v46, %s1108_s19 }
  0x4c   : > { %328 = vrot.lane.b32.xlu0 %v1211_v11, %s1108_s19  ;;  %326 = vrot.lane.b32.xlu1 %v1213_v12, %s1108_s19 }
  0x50   : > { %330 = vrot.lane.b32.xlu1 %v1225_v16, %s1108_s19 }
  0x92   : > { %v296_v48 = vpop.permute.xlu0 %295 }
  0x93   : > { %v382_v28 = vsel %vm381_vm3, %v1207_v8, %v296_v48 }
  0x96   : > { %v358_v49 = vpop.permute.xlu1 %357  ;;  %v356_v50 = vpop.permute.xlu0 %355 }
  0x9a   : > { %v347_v51 = vpop.permute.xlu1 %346  ;;  %v343_v52 = vpop.permute.xlu0 %342 }
  0x9b   : > { %v396_v4 = vsel %vm381_vm3, %v292_v24, %v343_v52  ;;  %v398_v6 = vsel %vm381_vm3, %v1265_v27, %v347_v51 }
  0x9c   : > { %v400_v15 = vsel %vm386_vm4, %v396_v4, %v356_v50 }
  0x9e   : > { %v349_v53 = vpop.permute.xlu1 %348  ;;  %v345_v54 = vpop.permute.xlu0 %344 }
  0x9f   : > { %v397_v1 = vsel %vm381_vm3, %v1250_v23, %v345_v54  ;;  %v399_v7 = vsel %vm381_vm3, %v336_v40, %v349_v53 }
  0xa0   : > { %v401_v5 = vsel %vm386_vm4, %v397_v1, %v358_v49 }
  0xa2   : > { %v300_v55 = vpop.permute.xlu0 %299  ;;  %v298_v56 = vpop.permute.xlu1 %297 }
  0xa3   : > { %v383_v25 = vsel %vm381_vm3, %v1215_v13, %v298_v56  ;;  %v384_v29 = vsel %vm381_vm3, %v1213_v12, %v300_v55 }
  0xa6   : > { %v360_v57 = vpop.permute.xlu0 %359  ;;  %v302_v58 = vpop.permute.xlu1 %301 }
  0xa7   : > { %v402_v10 = vsel %vm386_vm4, %v398_v6, %v360_v57  ;;  %v385_v30 = vsel %vm381_vm3, %v1211_v11, %v302_v58 }
  0xaa   : > { %v312_v59 = vpop.permute.xlu0 %311  ;;  %v362_v60 = vpop.permute.xlu1 %361 }
  0xab   : > { %v403_v14 = vsel %vm386_vm4, %v399_v7, %v362_v60  ;;  %v387_v32 = vsel %vm386_vm4, %v382_v28, %v312_v59 }
  0xae   : > { %v316_v61 = vpop.permute.xlu0 %315  ;;  %v314_v62 = vpop.permute.xlu1 %313 }
  0xaf   : > { %v388_v26 = vsel %vm386_vm4, %v383_v25, %v314_v62  ;;  %v389_v33 = vsel %vm386_vm4, %v384_v29, %v316_v61 }
  0xb2   : > { %v369_v63 = vpop.permute.xlu0 %368  ;;  %v318_v0 = vpop.permute.xlu1 %317 }
  0xb3   : > { %v404_v18 = vsel %vm391_vm5, %v400_v15, %v369_v63  ;;  %v390_v13 = vsel %vm386_vm4, %v385_v30, %v318_v0 }
  0xb6   : > { %v373_v2 = vpop.permute.xlu0 %372  ;;  %v371_v3 = vpop.permute.xlu1 %370 }
  0xb7   : > { %v405_v9 = vsel %vm391_vm5, %v401_v5, %v371_v3  ;;  %v406_v19 = vsel %vm391_vm5, %v402_v10, %v373_v2 }
  0xb8   : > { %v870_v21 = vcombine.low %v404_v18, %v405_v9 }
  0xba   : > { %v325_v16 = vpop.permute.xlu0 %324  ;;  %v375_v17 = vpop.permute.xlu1 %374 }
  0xbb   : > { %v407_v20 = vsel %vm391_vm5, %v403_v14, %v375_v17  ;;  %v392_v35 = vsel %vm391_vm5, %v387_v32, %v325_v16 }
  0xbc   : > { %v872_v22 = vcombine.low %v406_v19, %v407_v20 }
  0xbe   : > { %v327_v23 = vpop.permute.xlu1 %326  ;;  %v433_v24 = vpack.c.bf16 %v872_v22, %v870_v21  ;;  %v329_v27 = vpop.permute.xlu0 %328 }
  0xbf   : > { %v393_v31 = vsel %vm391_vm5, %v388_v26, %v327_v23  ;;  %v394_v36 = vsel %vm391_vm5, %v389_v33, %v329_v27 }
  0xc0   : > { %621 = vmatprep.mubr.bf16.mxu0 %v433_v24  ;;  %v869_v37 = vcombine.low %v392_v35, %v393_v31 }
  0xc2   : > { %v331_v34 = vpop.permute.xlu1 %330 }
  0xc3   : > { %v395_v8 = vsel %vm391_vm5, %v390_v13, %v331_v34 }
  0xc4   : > { %v871_v12 = vcombine.low %v394_v36, %v395_v8 }
  0xc6   : > { %v432_v38 = vpack.c.bf16 %v871_v12, %v869_v37 }
  0xc8   : > { %622 = vmatmul.mubr.bf16.vlgmr.msra.gmra.mxu0 %v432_v38 }
  0xeb   : > { %v664_v11 = vpop.f32.mrf.mxu1 }
  0xed   : > { %v933_v39 = vpop.f32.mrf.mxu1 }
  0xef   : > { %v667_v40 = vpop.f32.mrf.mxu1 }
  0xf1   : > { %v934_v41 = vpop.f32.mrf.mxu1 }
 0x188   : > { %v916_v43 = vpop.f32.mrf.mxu0 }
 0x18a   : > { %v917_v45 = vpop.f32.mrf.mxu0 }
 0x18b   : > { %v918_v46 = vadd.f32 %v917_v45, %v916_v43 }
 0x18c   : > { %v919_v47 = vpop.f32.mrf.mxu0 }
 0x18d   : > { %v624_v48 = vadd.f32 %v918_v46, %v873_v44 }
 0x18e   : > { %v920_v49 = vpop.f32.mrf.mxu0 }
 0x18f   : > { %v665_v50 = vadd.f32 %v664_v11, %v624_v48  ;;  %v921_v51 = vadd.f32 %v920_v49, %v919_v47 }
 0x191   : > { %v674_v52 = vmul.f32 0.70710677, %v665_v50  ;;  %v627_v53 = vadd.f32 %v921_v51, %v873_v44  ;;  %v671_v58 = vmul.f32 0.5, %v665_v50 }
 0x193   : > { %1009 = verf.f32 %v674_v52  ;;  %v668_v54 = vadd.f32 %v667_v40, %v627_v53 }
 0x195   : > { %v675_v55 = vmul.f32 0.70710677, %v668_v54  ;;  %v672_v61 = vmul.f32 0.5, %v668_v54 }
 0x197   : > { %1011 = verf.f32 %v675_v55 }
 0x1a0   : > { %v1010_v56 = vpop.eup %1009 }
 0x1a1   : > { %v678_v57 = vadd.f32 1.0, %v1010_v56 }
 0x1a3   : > { %v680_v60 = vmul.f32 %v678_v57, %v671_v58 }
 0x1a4   : > { %v1012_v59 = vpop.eup %1011 }
 0x1a5   : > { %v679_v62 = vadd.f32 1.0, %v1012_v59  ;;  %v683_v0 = vsel %vm682_vm6, %v680_v60, 0.0 }
 0x1a7   : > { %v681_v63 = vmul.f32 %v679_v62, %v672_v61 }
 0x1a9   : > { %v684_v1 = vsel %vm682_vm6, %v681_v63, 0.0 }
 0x1aa   : > { %v685_v2 = vadd.f32 %v684_v1, %v683_v0 }
 0x1ac   : > { %v686_v3 = vrot.slane %v685_v2, 4 }
 0x1ae   : > { %v687_v4 = vadd.f32 %v686_v3, %v685_v2 }
 0x1b0   : > { %v688_v5 = vrot.slane %v687_v4, 2 }
 0x1b2   : > { %v689_v6 = vadd.f32 %v688_v5, %v687_v4 }
 0x1b4   : > { %v690_v7 = vrot.slane %v689_v6, 1 }
 0x1b6   : > { %v691_v9 = vadd.f32 %v690_v7, %v689_v6 }
 0x1b8   : > { %v693_v10 = vmul.f32 0.0625, %v691_v9 }
 0x1ba   : > { %v696_v14 = vpack.c.bf16 %v693_v10, %v693_v10  ;;  %695 = vst.msk [vmem:[%s247_s16] sm:$0x1] %vm694_vm7, %v693_v10 }
 0x1bc   : > { %938 = vmatmul.mubr.msk.bf16.vlgmr.msra.gmra.mxu1 %vm682_vm6, %v696_v14 }
 0x1bd   : > { %1026 = shalt.err (!%p1023_p3)
}
 0x1be   : > { %s1027_s10 = scalar_lea.hbm %s765_s26, 16  ;;  %s1031_s16 = scalar_lea.hbm %s1451_s5, 32 }
 0x1bf   : > { %p1028_p4 = scmp.ne.s32.totalorder %s765_s26, %s1027_s10  ;;  %p1032_p9 = scmp.lt.s32.totalorder %s765_s26, %s1451_s5 }
 0x1c0   : > { %p1033_p10 = scmp.lt.s32.totalorder %s1031_s16, %s1027_s10 }
 0x1c1   : > { %p1029_p7 = pnand %p1028_p4, %p1185_p5 }
 0x1c2   : > { %p1034_p11 = por %p1033_p10, %p1032_p9 }
 0x1c3   : > { %p1030_p8 = pneg %p1029_p7 }
 0x1c5   : > { %p1035_p12 = pnand %p1034_p11, %p1030_p8 }
 0x1c7   : > { %1038 = shalt.err (!%p1035_p12)
}
 0x1c8   : > { %941 = dma.vmem_to_hbm [thread:$0]  (%p1185_p5), %s768_s18, 16, %s765_s26, %s751_s28   ;;  %v699_v15 = vld [vmem:[%s1450_s4] sm:$0x1] }
 0x1c9   : > { %s253_s29 = scalar_lea.vmem [#allocation5], %s1370_s13  ;;  %s1403_s12 = scalar_lea.hbm %s1452_s6, %s895_s17 }
 0x1ca   : > { %s780_s9 = sshll.u32 %s253_s29, 4  ;;  %s755_s18 = scalar_lea.sflag [#allocation6], %s1370_s13  ;;  %s1405_s9 = int_to_ptr.vmem [resolvable:$true] %s780_s9 }
 0x1cb   : > { %s1039_s26 = scalar_lea.vmem %s1405_s9, 16  ;;  %s1111_s25 = smov [#allocation5]  }
 0x1cc   : > { %p1040_p13 = scmp.ne.s32.totalorder %s1405_s9, %s1039_s26  ;;  %s1043_s28 = sshll.u32 %s1111_s25, 4  ;;  %s1044_s28 = int_to_ptr.vmem [resolvable:$false] %s1043_s28 }
 0x1cd   : > { %s1045_s17 = scalar_lea.vmem %s1044_s28, 32  ;;  %p1046_p2 = scmp.lt.s32.totalorder %s1405_s9, %s1044_s28 }
 0x1ce   : > { %p1041_p0 = pnand %p1040_p13, %p1185_p5  ;;  %p1047_p3 = scmp.lt.s32.totalorder %s1045_s17, %s1039_s26 }
 0x1d0   : > { %p1042_p1 = pneg %p1041_p0  ;;  %p1048_p4 = por %p1047_p3, %p1046_p2 }
 0x1d2   : > { %p1049_p7 = pnand %p1048_p4, %p1042_p1 }
 0x27c   : > { %v743_v16 = vpop.f32.mrf.mxu1 }
 0x27d   : > { %v744_v17 = vadd.f32 %v743_v16, %v699_v15 }
 0x27e   : > { %v939_v18 = vpop.f32.mrf.mxu1 }
 0x27f   : > { %749 = vst.msk [vmem:[%s253_s29] sm:$0x1] %vm694_vm7, %v744_v17 }
 0x280   : > { %v746_v19 = vpop.f32.mrf.mxu1 }
 0x281   : > { %1052 = shalt.err (!%p1049_p7)
}
 0x282   : > { %s1053_s16 = scalar_lea.hbm %s1403_s12, 16  ;;  %s1057_s20 = scalar_lea.hbm %s1452_s6, 32 }
 0x283   : > { %p1054_p8 = scmp.ne.s32.totalorder %s1403_s12, %s1053_s16  ;;  %p1058_p11 = scmp.lt.s32.totalorder %s1403_s12, %s1452_s6 }
 0x284   : > { %p1059_p12 = scmp.lt.s32.totalorder %s1057_s20, %s1053_s16 }
 0x285   : > { %p1055_p9 = pnand %p1054_p8, %p1185_p5 }
 0x286   : > { %p1060_p13 = por %p1059_p12, %p1058_p11 }
 0x287   : > { %p1056_p10 = pneg %p1055_p9 }
 0x289   : > { %p1061_p0 = pnand %p1060_p13, %p1056_p10 }
 0x28b   : > { %1064 = shalt.err (!%p1061_p0)
}
 0x28c   : > { %942 = dma.vmem_to_hbm [thread:$0]  (%p1185_p5), %s1405_s9, 16, %s1403_s12, %s755_s18   ;;  %v940_v20 = vpop.f32.mrf.mxu1 }
 0x28d PF: > { %p952_p1 = scmp.ge.s32.totalorder %s1103_s24, 2  ;;  %s792_s29 = sand.u32 1, %s1091_s21  }
 0x28e   : > { %s793_s10 = scalar_lea.sflag [#allocation4], %s792_s29 }
 0x28f   : > { %p946_p2 = pnand %p952_p1, %p1189_p6 }
 0x291   : > { %p947_p3 = pneg %p946_p2 }
 0x293   : > { %1082 = dma.done.wait (%p947_p3), %s793_s10, 16  }
 0x294   : > { %1084 = vsyncadd (%p947_p3), %s793_s10, 4294967280  ;;  %s801_s11 = scalar_lea.sflag [#allocation6], %s792_s29 }
 0x295   : > { %1086 = dma.done.wait (%p947_p3), %s801_s11, 16  }
 0x296   : > { %1088 = vsyncadd (%p947_p3), %s801_s11, 4294967280  ;;  %p20_p5 = scmp.ge.s32.totalorder %s1172_s27, 4   ;;  %s1455_s21 = smov %s1095_s22 }
 0x297   : > { %s1456_s22 = smov %s1099_s23  ;;  %s1457_s23 = smov %s1183_s30 }
 0x298   : > { %s1458_s24 = smov %s1172_s27  ;;  %22 = sbr.rel (!%p20_p5) target bundleno = 5 (0x5), region = 93 }
 0x29d   :  { %805 = vsyncpa [#allocation4], 1 }
 0x29e   :  { %807 = vsyncpa [#allocation4 + $0x1], 1 }
 0x29f   :  { %808 = vsyncpa [#allocation6], 1 }
 0x2a0   :  { %810 = vsyncpa [#allocation6 + $0x1], 1 }

// kernel: conv_mixer_forward.4
= control target key start
LH: loop header
LB: loop body
LE: loop exit
PB: predicated region body
PF: predicated region fallthrough
CT: control target
= control target key end

     0   :  { %s1349_s18 = smov 0   ;;  %s1351_s19 = smov 0   ;;  %s1646_s0 = inlined_call_operand.vmem [shape: bf16[2,4,4,32], index: 0, kind: input, shape index: {}]   ;;  %s1647_s1 = inlined_call_operand.vmem [shape: f32[3,5,5,32], index: 1, kind: input, shape index: {}]   ;;  %s1648_s2 = inlined_call_operand.vmem [shape: f32[3,1,32], index: 2, kind: input, shape index: {}]   ;;  %s1649_s3 = inlined_call_operand.vmem [shape: bf16[3,32,32], index: 3, kind: input, shape index: {}]   ;;  %s1650_s4 = inlined_call_operand.vmem [shape: f32[3,1,32], index: 4, kind: input, shape index: {}]   ;;  %s1651_s5 = inlined_call_operand.vmem [shape: bf16[2,4,4,32], index: 5, kind: output, shape index: {}]  }
   0x1   :  { %s1353_s20 = smov 0   ;;  %s1355_s21 = smov 0  }
   0x2   :  { %s1357_s22 = smov 0  }
   0x3 LB: > { %s24_s23 = sadd.s32 1, %s1306_s20  ;;  %s27_s24 = sadd.s32 1, %s1310_s21  ;;  %s1314_s22 = sphi %s1357_s22, %s15_s22   ;;  %s1310_s21 = sphi %s1355_s21, %s1655_s21   ;;  %s1306_s20 = sphi %s1353_s20, %s1654_s20   ;;  %s1302_s19 = sphi %s1351_s19, %s1653_s19   ;;  %s1298_s18 = sphi %s1349_s18, %s1652_s18  }
   0x4   : > { %p25_p0 = scmp.ge.s32.totalorder %s24_s23, 3  ;;  %p1178_p1 = scmp.ge.s32.totalorder %s1314_s22, 1 }
   0x5   : > { %p235_p2 = scmp.lt.s32.totalorder %s1314_s22, 7 }
   0x6   : > { %s1657_s23 = smov (%p25_p0, %s24_s23), 0  ;;  %s1659_s24 = smov (!%p25_p0, %s27_s24), %s1310_s21 }
   0x7   : > { %p236_p3 = pnand %p1178_p1, %p235_p2  ;;  %p29_p4 = scmp.ge.s32.totalorder %s1659_s24, 2 }
   0x8   : > { %p279_p5 = scmp.lt.s32.totalorder (!%p236_p3), %s1302_s19, 1  ;;  %p284_p6 = scmp.lt.s32.totalorder (!%p236_p3), %s1298_s18, 2 }
   0x9   : > { %s1661_s24 = smov (%p29_p4, %s1659_s24), 0  ;;  %239 = sbr.rel (%p236_p3) target bundleno = 401 (0x191), region = 40 }
   0xa   : > { %p1186_p7 = scmp.ne.s32.totalorder (!%p236_p3), %s1298_s18, 0 }
   0xe   : > { %s1663_s19 = smov (!%p279_p5, %s1302_s19), 1 }
   0xf   : > { %s1383_s25 = scalar_select %p284_p6, %s1298_s18, 2 }
  0x10   : > { %s1196_s26 = sshll.u32 %s1663_s19, 3  ;;  %309 = sbr.rel (%p1186_p7) target bundleno = 28 (0x1c), region = 44 }
  0x11   : > { %s283_s29 = scalar_lea.vmem %s1646_s0, %s1196_s26  ;;  %s1210_s30 = smul.u32 40, %s1383_s25 }
  0x12   : > { %s291_s8 = scalar_lea.vmem %s1648_s2, %s1383_s25  ;;  %s1197_s9 = sshll.u32 %s1383_s25, 4 }
  0x13   : > { %s1397_s12 = scalar_lea.vmem %s1647_s1, %s1210_s30  ;;  %s1402_s15 = scalar_lea.vmem %s1649_s3, %s1197_s9 }
  0x14   : > { %s299_s19 = scalar_lea.vmem %s1650_s4, %s1383_s25  ;;  %s1411_s6 = scalar_lea.vmem %s1651_s5, %s1196_s26 }
  0x15   : > { %vm310_vm0 = vcmask 261120   ;;  %v319_v0 = vld [vmem:[%s283_s29] sm:$0x3]  ;;  %vm328_vm1 = vcmask 257024   ;;  %v1316_v1 = vmov 0.0  }
  0x16   : > { %313 = vst.msk [vmem:[#allocation2 + $0x10] sm:$0xff] %vm310_vm0, %v1316_v1  ;;  %311 = vst.msk [vmem:[#allocation2] sm:$0xff] %vm310_vm0, %v1316_v1  ;;  %v323_v2 = vunpack.c.l.bf16 %v319_v0  ;;  %v320_v3 = vld [vmem:[%s283_s29 + $0x2] sm:$0x3]  ;;  %v321_v4 = vld [vmem:[%s283_s29 + $0x4] sm:$0x3] }
  0x17   : > { %312 = vst.msk [vmem:[#allocation2 + $0x8] sm:$0xff] %vm310_vm0, %v1316_v1  ;;  %314 = vst.msk [vmem:[#allocation2 + $0x18] sm:$0xff] %vm310_vm0, %v1316_v1  ;;  %v322_v5 = vld [vmem:[%s283_s29 + $0x6] sm:$0x3]  ;;  %v324_v6 = vunpack.c.l.bf16 %v320_v3  ;;  %v325_v7 = vunpack.c.l.bf16 %v321_v4 }
  0x18   : > { %315 = vst.msk [vmem:[#allocation2 + $0x20] sm:$0xff] %vm310_vm0, %v1316_v1  ;;  %316 = vst.msk [vmem:[#allocation2 + $0x28] sm:$0xff] %vm310_vm0, %v1316_v1  ;;  %v326_v8 = vunpack.c.l.bf16 %v322_v5 }
  0x19   : > { %317 = vst.msk [vmem:[#allocation2 + $0x30] sm:$0xff] %vm310_vm0, %v1316_v1  ;;  %318 = vst.msk [vmem:[#allocation2 + $0x38] sm:$0xff] %vm310_vm0, %v1316_v1 }
  0x1a   : > { %329 = vst.msk [vmem:[#allocation2 + $0x12] sm:$0xf] %vm328_vm1, %v323_v2  ;;  %330 = vst.msk [vmem:[#allocation2 + $0x1a] sm:$0xf] %vm328_vm1, %v324_v6 }
  0x1b   : > { %331 = vst.msk [vmem:[#allocation2 + $0x22] sm:$0xf] %vm328_vm1, %v325_v7  ;;  %332 = vst.msk [vmem:[#allocation2 + $0x2a] sm:$0xf] %vm328_vm1, %v326_v8 }
  0x1c PF: > { %v1254_v9 = vld [vmem:[%s1402_s15 + $0x8] sm:$0xff]   ;;  %v346_v10 = vlaneseq  ;;  %v1317_v11 = vmov 0.0   ;;  %v1255_v12 = vld [vmem:[%s1402_s15] sm:$0xff]   ;;  %vm1318_vm2 = vmmov 0   ;;  %v1441_v22 = vld [vmem:[%s1397_s12 + $0x10] sm:$0x1f] }
  0x1d   : > { %1202 = vmatprep.subr.bf16.mxu0 %v1317_v11  ;;  %1206 = vmatprep.mubr.msk.bf16.mxu0 %vm1318_vm2, %v1317_v11  ;;  %v1422_v14 = vld [vmem:[#allocation2] sm:$0xff]  ;;  %v1438_v21 = vld [vmem:[%s1397_s12 + $0x8] sm:$0x1f]  ;;  %v1444_v23 = vld [vmem:[%s1397_s12 + $0x18] sm:$0x1f]  ;;  %vm962_vm3 = vcmask 261120  }
  0x1e   : > { %1203 = vmatpush3.bf16.msra.mxu0 %v1254_v9  ;;  %v1420_v13 = vshrl.u32 %v346_v10, 7  ;;  %v1424_v15 = vld [vmem:[#allocation2 + $0x8] sm:$0xff]  ;;  %v1431_v18 = vld [vmem:[%s1397_s12] sm:$0x1f]  ;;  %p1192_p8 = scmp.ge.s32.totalorder %s1298_s18, 2 }
  0x1f   : > { %1204 = vmatprep.subr.bf16.mxu0 %v1317_v11  ;;  %v1449_v25 = vld [vmem:[%s1397_s12 + $0x20] sm:$0x1f] }
  0x20   : > { %v348_v19 = vsub.s32 0, %v1420_v13  ;;  %v1435_v20 = vsub.s32 1, %v1420_v13  ;;  %v1468_v39 = vld [vmem:[#allocation2 + $0x30] sm:$0xff]  ;;  %v1478_v48 = vld [vmem:[#allocation2 + $0x38] sm:$0xff] }
  0x21   : > { %v1426_v16 = vld [vmem:[#allocation2 + $0x10] sm:$0xff]  ;;  %v1428_v17 = vld [vmem:[#allocation2 + $0x18] sm:$0xff] }
  0x22   : > { %1205 = vmatpush3.bf16.msra.mxu0 %v1255_v12  ;;  %v1446_v24 = vld [vmem:[#allocation2 + $0x20] sm:$0xff]  ;;  %v349_v26 = vrot.slane %v1431_v18, %v348_v19  ;;  %v357_v27 = vrot.slane %v1438_v21, %v348_v19  ;;  %v369_v28 = vrot.slane %v1441_v22, %v348_v19  ;;  %v381_v29 = vrot.slane %v1444_v23, %v348_v19  ;;  %v1455_v30 = vld [vmem:[#allocation2 + $0x28] sm:$0xff] }
  0x23   : > { %v393_v31 = vrot.slane %v1449_v25, %v348_v19  ;;  %v405_v32 = vrot.slane %v1431_v18, %v1435_v20  ;;  %v429_v33 = vrot.slane %v1438_v21, %v1435_v20  ;;  %v453_v34 = vrot.slane %v1441_v22, %v1435_v20 }
  0x24   : > { %v350_v35 = vmul.f32 %v349_v26, %v1422_v14  ;;  %v351_v36 = vmul.f32 %v349_v26, %v1424_v15  ;;  %v352_v37 = vmul.f32 %v349_v26, %v1426_v16  ;;  %v353_v38 = vmul.f32 %v349_v26, %v1428_v17 }
  0x25   : > { %v358_v40 = vmul.f32 %v357_v27, %v1424_v15  ;;  %v359_v41 = vmul.f32 %v357_v27, %v1426_v16  ;;  %v360_v42 = vmul.f32 %v357_v27, %v1428_v17  ;;  %v361_v43 = vmul.f32 %v357_v27, %v1446_v24 }
  0x26   : > { %v370_v44 = vmul.f32 %v369_v28, %v1426_v16  ;;  %v371_v45 = vmul.f32 %v369_v28, %v1428_v17  ;;  %v372_v46 = vmul.f32 %v369_v28, %v1446_v24  ;;  %v373_v47 = vmul.f32 %v369_v28, %v1455_v30 }
  0x27   : > { %v362_v49 = vadd.f32 %v358_v40, %v350_v35  ;;  %v363_v50 = vadd.f32 %v359_v41, %v351_v36  ;;  %v364_v51 = vadd.f32 %v360_v42, %v352_v37  ;;  %v365_v52 = vadd.f32 %v361_v43, %v353_v38 }
  0x28   : > { %v382_v53 = vmul.f32 %v381_v29, %v1428_v17  ;;  %v383_v54 = vmul.f32 %v381_v29, %v1446_v24  ;;  %v384_v55 = vmul.f32 %v381_v29, %v1455_v30  ;;  %v385_v56 = vmul.f32 %v381_v29, %v1468_v39 }
  0x29   : > { %v374_v57 = vadd.f32 %v370_v44, %v362_v49  ;;  %v375_v58 = vadd.f32 %v371_v45, %v363_v50  ;;  %v376_v59 = vadd.f32 %v372_v46, %v364_v51  ;;  %v377_v60 = vadd.f32 %v373_v47, %v365_v52 }
  0x2a   : > { %v394_v61 = vmul.f32 %v393_v31, %v1446_v24  ;;  %v395_v62 = vmul.f32 %v393_v31, %v1455_v30  ;;  %v396_v63 = vmul.f32 %v393_v31, %v1468_v39  ;;  %v397_v0 = vmul.f32 %v393_v31, %v1478_v48 }
  0x2b   : > { %v386_v1 = vadd.f32 %v382_v53, %v374_v57  ;;  %v387_v2 = vadd.f32 %v383_v54, %v375_v58  ;;  %v388_v3 = vadd.f32 %v384_v55, %v376_v59  ;;  %v389_v4 = vadd.f32 %v385_v56, %v377_v60 }
  0x2c   : > { %v406_v5 = vmul.f32 %v405_v32, %v1422_v14  ;;  %v407_v6 = vmul.f32 %v405_v32, %v1424_v15  ;;  %v408_v7 = vmul.f32 %v405_v32, %v1426_v16  ;;  %v409_v8 = vmul.f32 %v405_v32, %v1428_v17 }
  0x2d   : > { %v398_v9 = vadd.f32 %v394_v61, %v386_v1  ;;  %v399_v10 = vadd.f32 %v395_v62, %v387_v2  ;;  %v400_v11 = vadd.f32 %v396_v63, %v388_v3  ;;  %v401_v12 = vadd.f32 %v397_v0, %v389_v4 }
  0x2e   : > { %v414_v19 = vrot.slane %v406_v5, 1  ;;  %v415_v26 = vrot.slane %v407_v6, 1  ;;  %v416_v27 = vrot.slane %v408_v7, 1  ;;  %v417_v28 = vrot.slane %v409_v8, 1 }
  0x2f   : > { %v430_v29 = vmul.f32 %v429_v33, %v1424_v15  ;;  %v431_v31 = vmul.f32 %v429_v33, %v1426_v16  ;;  %v432_v35 = vmul.f32 %v429_v33, %v1428_v17  ;;  %v433_v36 = vmul.f32 %v429_v33, %v1446_v24 }
  0x30   : > { %v422_v37 = vadd.f32 %v414_v19, %v398_v9  ;;  %v423_v38 = vadd.f32 %v415_v26, %v399_v10  ;;  %v424_v40 = vadd.f32 %v416_v27, %v400_v11  ;;  %v425_v32 = vadd.f32 %v417_v28, %v401_v12 }
  0x31   : > { %v438_v41 = vrot.slane %v430_v29, 1  ;;  %v439_v42 = vrot.slane %v431_v31, 1  ;;  %v440_v43 = vrot.slane %v432_v35, 1  ;;  %v441_v44 = vrot.slane %v433_v36, 1 }
  0x32   : > { %v454_v45 = vmul.f32 %v453_v34, %v1426_v16  ;;  %v455_v46 = vmul.f32 %v453_v34, %v1428_v17  ;;  %v456_v47 = vmul.f32 %v453_v34, %v1446_v24  ;;  %v457_v49 = vmul.f32 %v453_v34, %v1455_v30 }
  0x33   : > { %v446_v50 = vadd.f32 %v438_v41, %v422_v37  ;;  %v447_v51 = vadd.f32 %v439_v42, %v423_v38  ;;  %v448_v52 = vadd.f32 %v440_v43, %v424_v40  ;;  %v449_v33 = vadd.f32 %v441_v44, %v425_v32 }
  0x34   : > { %v462_v53 = vrot.slane %v454_v45, 1  ;;  %v463_v54 = vrot.slane %v455_v46, 1  ;;  %v464_v55 = vrot.slane %v456_v47, 1  ;;  %v465_v56 = vrot.slane %v457_v49, 1 }
  0x35   : > { %v477_v57 = vrot.slane %v1444_v23, %v1435_v20  ;;  %v501_v58 = vrot.slane %v1449_v25, %v1435_v20  ;;  %v1505_v59 = vsub.s32 2, %v1420_v13  ;;  %v1508_v60 = vsub.s32 3, %v1420_v13 }
  0x36   : > { %v470_v34 = vadd.f32 %v462_v53, %v446_v50  ;;  %v471_v61 = vadd.f32 %v463_v54, %v447_v51  ;;  %v472_v62 = vadd.f32 %v464_v55, %v448_v52  ;;  %v473_v63 = vadd.f32 %v465_v56, %v449_v33 }
  0x37   : > { %v478_v0 = vmul.f32 %v477_v57, %v1428_v17  ;;  %v479_v1 = vmul.f32 %v477_v57, %v1446_v24  ;;  %v480_v2 = vmul.f32 %v477_v57, %v1455_v30  ;;  %v481_v3 = vmul.f32 %v477_v57, %v1468_v39 }
  0x38   : > { %v502_v20 = vmul.f32 %v501_v58, %v1446_v24  ;;  %v503_v4 = vmul.f32 %v501_v58, %v1455_v30  ;;  %v504_v5 = vmul.f32 %v501_v58, %v1468_v39  ;;  %v505_v6 = vmul.f32 %v501_v58, %v1478_v48 }
  0x39   : > { %v486_v7 = vrot.slane %v478_v0, 1  ;;  %v487_v8 = vrot.slane %v479_v1, 1  ;;  %v488_v9 = vrot.slane %v480_v2, 1  ;;  %v489_v10 = vrot.slane %v481_v3, 1 }
  0x3a   : > { %v510_v11 = vrot.slane %v502_v20, 1  ;;  %v511_v12 = vrot.slane %v503_v4, 1  ;;  %v512_v19 = vrot.slane %v504_v5, 1  ;;  %v513_v26 = vrot.slane %v505_v6, 1 }
  0x3b   : > { %v494_v27 = vadd.f32 %v486_v7, %v470_v34  ;;  %v495_v28 = vadd.f32 %v487_v8, %v471_v61  ;;  %v496_v29 = vadd.f32 %v488_v9, %v472_v62  ;;  %v497_v31 = vadd.f32 %v489_v10, %v473_v63 }
  0x3c   : > { %v525_v35 = vrot.slane %v1431_v18, %v1505_v59  ;;  %v549_v36 = vrot.slane %v1438_v21, %v1505_v59  ;;  %v573_v37 = vrot.slane %v1441_v22, %v1505_v59  ;;  %v597_v38 = vrot.slane %v1444_v23, %v1505_v59 }
  0x3d   : > { %v518_v40 = vadd.f32 %v510_v11, %v494_v27  ;;  %v519_v32 = vadd.f32 %v511_v12, %v495_v28  ;;  %v520_v41 = vadd.f32 %v512_v19, %v496_v29  ;;  %v521_v42 = vadd.f32 %v513_v26, %v497_v31 }
  0x3e   : > { %v526_v43 = vmul.f32 %v525_v35, %v1422_v14  ;;  %v527_v44 = vmul.f32 %v525_v35, %v1424_v15  ;;  %v528_v45 = vmul.f32 %v525_v35, %v1426_v16  ;;  %v529_v46 = vmul.f32 %v525_v35, %v1428_v17 }
  0x3f   : > { %v550_v47 = vmul.f32 %v549_v36, %v1424_v15  ;;  %v551_v49 = vmul.f32 %v549_v36, %v1426_v16  ;;  %v552_v50 = vmul.f32 %v549_v36, %v1428_v17  ;;  %v553_v51 = vmul.f32 %v549_v36, %v1446_v24 }
  0x40   : > { %v534_v52 = vrot.slane %v526_v43, 2  ;;  %v535_v33 = vrot.slane %v527_v44, 2  ;;  %v536_v53 = vrot.slane %v528_v45, 2  ;;  %v537_v54 = vrot.slane %v529_v46, 2 }
  0x41   : > { %v558_v55 = vrot.slane %v550_v47, 2  ;;  %v559_v56 = vrot.slane %v551_v49, 2  ;;  %v560_v57 = vrot.slane %v552_v50, 2  ;;  %v561_v58 = vrot.slane %v553_v51, 2 }
  0x42   : > { %v542_v34 = vadd.f32 %v534_v52, %v518_v40  ;;  %v543_v61 = vadd.f32 %v535_v33, %v519_v32  ;;  %v544_v62 = vadd.f32 %v536_v53, %v520_v41  ;;  %v545_v63 = vadd.f32 %v537_v54, %v521_v42 }
  0x43   : > { %v574_v0 = vmul.f32 %v573_v37, %v1426_v16  ;;  %v575_v1 = vmul.f32 %v573_v37, %v1428_v17  ;;  %v576_v2 = vmul.f32 %v573_v37, %v1446_v24  ;;  %v577_v3 = vmul.f32 %v573_v37, %v1455_v30 }
  0x44   : > { %v566_v20 = vadd.f32 %v558_v55, %v542_v34  ;;  %v567_v4 = vadd.f32 %v559_v56, %v543_v61  ;;  %v568_v5 = vadd.f32 %v560_v57, %v544_v62  ;;  %v569_v6 = vadd.f32 %v561_v58, %v545_v63 }
  0x45   : > { %v582_v7 = vrot.slane %v574_v0, 2  ;;  %v583_v8 = vrot.slane %v575_v1, 2  ;;  %v584_v9 = vrot.slane %v576_v2, 2  ;;  %v585_v10 = vrot.slane %v577_v3, 2 }
  0x46   : > { %v598_v11 = vmul.f32 %v597_v38, %v1428_v17  ;;  %v599_v12 = vmul.f32 %v597_v38, %v1446_v24  ;;  %v600_v19 = vmul.f32 %v597_v38, %v1455_v30  ;;  %v601_v26 = vmul.f32 %v597_v38, %v1468_v39 }
  0x47   : > { %v590_v27 = vadd.f32 %v582_v7, %v566_v20  ;;  %v591_v28 = vadd.f32 %v583_v8, %v567_v4  ;;  %v592_v29 = vadd.f32 %v584_v9, %v568_v5  ;;  %v593_v31 = vadd.f32 %v585_v10, %v569_v6 }
  0x48   : > { %v606_v35 = vrot.slane %v598_v11, 2  ;;  %v607_v36 = vrot.slane %v599_v12, 2  ;;  %v608_v37 = vrot.slane %v600_v19, 2  ;;  %v609_v40 = vrot.slane %v601_v26, 2 }
  0x49   : > { %v621_v32 = vrot.slane %v1449_v25, %v1505_v59  ;;  %v645_v41 = vrot.slane %v1431_v18, %v1508_v60  ;;  %v669_v42 = vrot.slane %v1438_v21, %v1508_v60  ;;  %v693_v38 = vrot.slane %v1441_v22, %v1508_v60 }
  0x4a   : > { %v614_v43 = vadd.f32 %v606_v35, %v590_v27  ;;  %v615_v44 = vadd.f32 %v607_v36, %v591_v28  ;;  %v616_v45 = vadd.f32 %v608_v37, %v592_v29  ;;  %v617_v46 = vadd.f32 %v609_v40, %v593_v31 }
  0x4b   : > { %v622_v47 = vmul.f32 %v621_v32, %v1446_v24  ;;  %v623_v49 = vmul.f32 %v621_v32, %v1455_v30  ;;  %v624_v50 = vmul.f32 %v621_v32, %v1468_v39  ;;  %v625_v59 = vmul.f32 %v621_v32, %v1478_v48 }
  0x4c   : > { %v646_v51 = vmul.f32 %v645_v41, %v1422_v14  ;;  %v647_v52 = vmul.f32 %v645_v41, %v1424_v15  ;;  %v648_v33 = vmul.f32 %v645_v41, %v1426_v16  ;;  %v649_v53 = vmul.f32 %v645_v41, %v1428_v17 }
  0x4d   : > { %v630_v54 = vrot.slane %v622_v47, 2  ;;  %v631_v55 = vrot.slane %v623_v49, 2  ;;  %v632_v56 = vrot.slane %v624_v50, 2  ;;  %v633_v57 = vrot.slane %v625_v59, 2 }
  0x4e   : > { %v654_v58 = vrot.slane %v646_v51, 3  ;;  %v655_v34 = vrot.slane %v647_v52, 3  ;;  %v656_v61 = vrot.slane %v648_v33, 3  ;;  %v657_v62 = vrot.slane %v649_v53, 3 }
  0x4f   : > { %v638_v63 = vadd.f32 %v630_v54, %v614_v43  ;;  %v639_v0 = vadd.f32 %v631_v55, %v615_v44  ;;  %v640_v1 = vadd.f32 %v632_v56, %v616_v45  ;;  %v641_v2 = vadd.f32 %v633_v57, %v617_v46 }
  0x50   : > { %v670_v3 = vmul.f32 %v669_v42, %v1424_v15  ;;  %v671_v20 = vmul.f32 %v669_v42, %v1426_v16  ;;  %v672_v4 = vmul.f32 %v669_v42, %v1428_v17  ;;  %v673_v5 = vmul.f32 %v669_v42, %v1446_v24 }
  0x51   : > { %v662_v6 = vadd.f32 %v654_v58, %v638_v63  ;;  %v663_v7 = vadd.f32 %v655_v34, %v639_v0  ;;  %v664_v8 = vadd.f32 %v656_v61, %v640_v1  ;;  %v665_v9 = vadd.f32 %v657_v62, %v641_v2 }
  0x52   : > { %v678_v10 = vrot.slane %v670_v3, 3  ;;  %v679_v11 = vrot.slane %v671_v20, 3  ;;  %v680_v12 = vrot.slane %v672_v4, 3  ;;  %v681_v19 = vrot.slane %v673_v5, 3 }
  0x53   : > { %v694_v26 = vmul.f32 %v693_v38, %v1426_v16  ;;  %v695_v27 = vmul.f32 %v693_v38, %v1428_v17  ;;  %v696_v28 = vmul.f32 %v693_v38, %v1446_v24  ;;  %v697_v29 = vmul.f32 %v693_v38, %v1455_v30 }
  0x54   : > { %v686_v31 = vadd.f32 %v678_v10, %v662_v6  ;;  %v687_v35 = vadd.f32 %v679_v11, %v663_v7  ;;  %v688_v36 = vadd.f32 %v680_v12, %v664_v8  ;;  %v689_v37 = vadd.f32 %v681_v19, %v665_v9 }
  0x55   : > { %v702_v40 = vrot.slane %v694_v26, 3  ;;  %v703_v32 = vrot.slane %v695_v27, 3  ;;  %v704_v41 = vrot.slane %v696_v28, 3  ;;  %v705_v42 = vrot.slane %v697_v29, 3 }
  0x56   : > { %v717_v43 = vrot.slane %v1444_v23, %v1508_v60  ;;  %v741_v44 = vrot.slane %v1449_v25, %v1508_v60  ;;  %v1571_v45 = vsub.s32 4, %v1420_v13 }
  0x57   : > { %v710_v46 = vadd.f32 %v702_v40, %v686_v31  ;;  %v711_v47 = vadd.f32 %v703_v32, %v687_v35  ;;  %v712_v38 = vadd.f32 %v704_v41, %v688_v36  ;;  %v713_v49 = vadd.f32 %v705_v42, %v689_v37 }
  0x58   : > { %v718_v50 = vmul.f32 %v717_v43, %v1428_v17  ;;  %v719_v59 = vmul.f32 %v717_v43, %v1446_v24  ;;  %v720_v51 = vmul.f32 %v717_v43, %v1455_v30  ;;  %v721_v52 = vmul.f32 %v717_v43, %v1468_v39 }
  0x59   : > { %v742_v33 = vmul.f32 %v741_v44, %v1446_v24  ;;  %v743_v53 = vmul.f32 %v741_v44, %v1455_v30  ;;  %v744_v60 = vmul.f32 %v741_v44, %v1468_v39  ;;  %v745_v13 = vmul.f32 %v741_v44, %v1478_v48 }
  0x5a   : > { %v726_v54 = vrot.slane %v718_v50, 3  ;;  %v727_v55 = vrot.slane %v719_v59, 3  ;;  %v728_v56 = vrot.slane %v720_v51, 3  ;;  %v729_v57 = vrot.slane %v721_v52, 3 }
  0x5b   : > { %v750_v58 = vrot.slane %v742_v33, 3  ;;  %v751_v34 = vrot.slane %v743_v53, 3  ;;  %v752_v61 = vrot.slane %v744_v60, 3  ;;  %v753_v62 = vrot.slane %v745_v13, 3 }
  0x5c   : > { %v734_v63 = vadd.f32 %v726_v54, %v710_v46  ;;  %v735_v0 = vadd.f32 %v727_v55, %v711_v47  ;;  %v736_v1 = vadd.f32 %v728_v56, %v712_v38  ;;  %v737_v2 = vadd.f32 %v729_v57, %v713_v49 }
  0x5d   : > { %v765_v3 = vrot.slane %v1431_v18, %v1571_v45  ;;  %v789_v20 = vrot.slane %v1438_v21, %v1571_v45  ;;  %v813_v4 = vrot.slane %v1441_v22, %v1571_v45  ;;  %v837_v5 = vrot.slane %v1444_v23, %v1571_v45 }
  0x5e   : > { %v758_v6 = vadd.f32 %v750_v58, %v734_v63  ;;  %v759_v7 = vadd.f32 %v751_v34, %v735_v0  ;;  %v760_v8 = vadd.f32 %v752_v61, %v736_v1  ;;  %v761_v9 = vadd.f32 %v753_v62, %v737_v2 }
  0x5f   : > { %v766_v10 = vmul.f32 %v765_v3, %v1422_v14  ;;  %v767_v11 = vmul.f32 %v765_v3, %v1424_v15  ;;  %v768_v12 = vmul.f32 %v765_v3, %v1426_v16  ;;  %v769_v18 = vmul.f32 %v765_v3, %v1428_v17 }
  0x60   : > { %v790_v21 = vmul.f32 %v789_v20, %v1424_v15  ;;  %v791_v19 = vmul.f32 %v789_v20, %v1426_v16  ;;  %v792_v22 = vmul.f32 %v789_v20, %v1428_v17  ;;  %v793_v23 = vmul.f32 %v789_v20, %v1446_v24 }
  0x61   : > { %v774_v26 = vrot.slane %v766_v10, 4  ;;  %v775_v27 = vrot.slane %v767_v11, 4  ;;  %v776_v28 = vrot.slane %v768_v12, 4  ;;  %v777_v29 = vrot.slane %v769_v18, 4 }
  0x62   : > { %v798_v31 = vrot.slane %v790_v21, 4  ;;  %v799_v14 = vrot.slane %v791_v19, 4  ;;  %v800_v35 = vrot.slane %v792_v22, 4  ;;  %v801_v36 = vrot.slane %v793_v23, 4 }
  0x63   : > { %v782_v37 = vadd.f32 %v774_v26, %v758_v6  ;;  %v783_v40 = vadd.f32 %v775_v27, %v759_v7  ;;  %v784_v32 = vadd.f32 %v776_v28, %v760_v8  ;;  %v785_v41 = vadd.f32 %v777_v29, %v761_v9 }
  0x64   : > { %v814_v15 = vmul.f32 %v813_v4, %v1426_v16  ;;  %v815_v42 = vmul.f32 %v813_v4, %v1428_v17  ;;  %v816_v43 = vmul.f32 %v813_v4, %v1446_v24  ;;  %v817_v44 = vmul.f32 %v813_v4, %v1455_v30 }
  0x65   : > { %v806_v46 = vadd.f32 %v798_v31, %v782_v37  ;;  %v807_v47 = vadd.f32 %v799_v14, %v783_v40  ;;  %v808_v38 = vadd.f32 %v800_v35, %v784_v32  ;;  %v809_v49 = vadd.f32 %v801_v36, %v785_v41 }
  0x66   : > { %v822_v50 = vrot.slane %v814_v15, 4  ;;  %v823_v59 = vrot.slane %v815_v42, 4  ;;  %v824_v51 = vrot.slane %v816_v43, 4  ;;  %v825_v52 = vrot.slane %v817_v44, 4 }
  0x67   : > { %v838_v33 = vmul.f32 %v837_v5, %v1428_v17  ;;  %v839_v53 = vmul.f32 %v837_v5, %v1446_v24  ;;  %v840_v60 = vmul.f32 %v837_v5, %v1455_v30  ;;  %v841_v13 = vmul.f32 %v837_v5, %v1468_v39 }
  0x68   : > { %v830_v54 = vadd.f32 %v822_v50, %v806_v46  ;;  %v831_v55 = vadd.f32 %v823_v59, %v807_v47  ;;  %v832_v56 = vadd.f32 %v824_v51, %v808_v38  ;;  %v833_v57 = vadd.f32 %v825_v52, %v809_v49 }
  0x69   : > { %v846_v58 = vrot.slane %v838_v33, 4  ;;  %v847_v34 = vrot.slane %v839_v53, 4  ;;  %v848_v61 = vrot.slane %v840_v60, 4  ;;  %v849_v62 = vrot.slane %v841_v13, 4 }
  0x6a   : > { %v861_v63 = vrot.slane %v1449_v25, %v1571_v45  ;;  %v1187_v25 = vld [vmem:[%s291_s8] ss:$0 sm:$0xff]  ;;  %v918_v37 = vrot.slane %v1426_v16, 2  ;;  %v919_v15 = vrot.slane %v1428_v17, 2  ;;  %v920_v46 = vrot.slane %v1446_v24, 2 }
  0x6b   : > { %v854_v0 = vadd.f32 %v846_v58, %v830_v54  ;;  %v855_v1 = vadd.f32 %v847_v34, %v831_v55  ;;  %v856_v2 = vadd.f32 %v848_v61, %v832_v56  ;;  %v857_v3 = vadd.f32 %v849_v62, %v833_v57 }
  0x6c   : > { %v862_v20 = vmul.f32 %v861_v63, %v1446_v24  ;;  %v863_v4 = vmul.f32 %v861_v63, %v1455_v30  ;;  %v864_v5 = vmul.f32 %v861_v63, %v1468_v39  ;;  %v865_v6 = vmul.f32 %v861_v63, %v1478_v48  ;;  %v1188_v24 = vld [vmem:[%s299_s19] ss:$0 sm:$0xff] }
  0x6d   : > { %v921_v49 = vrot.slane %v1455_v30, 2 }
  0x6e   : > { %v870_v7 = vrot.slane %v862_v20, 4  ;;  %v871_v8 = vrot.slane %v863_v4, 4  ;;  %v872_v9 = vrot.slane %v864_v5, 4  ;;  %v873_v10 = vrot.slane %v865_v6, 4 }
  0x70   : > { %v878_v45 = vadd.f32 %v870_v7, %v854_v0  ;;  %v879_v11 = vadd.f32 %v871_v8, %v855_v1  ;;  %v880_v12 = vadd.f32 %v872_v9, %v856_v2  ;;  %v881_v18 = vadd.f32 %v873_v10, %v857_v3 }
  0x72   : > { %v889_v21 = vadd.f32 %v1187_v25, %v878_v45  ;;  %v890_v19 = vadd.f32 %v1187_v25, %v879_v11  ;;  %v891_v22 = vadd.f32 %v1187_v25, %v880_v12  ;;  %v892_v23 = vadd.f32 %v1187_v25, %v881_v18 }
  0x74   : > { %v898_v39 = vmul.f32 0.70710677, %v889_v21  ;;  %v899_v26 = vmul.f32 0.70710677, %v890_v19  ;;  %v900_v48 = vmul.f32 0.70710677, %v891_v22 }
  0x75   : > { %v901_v27 = vmul.f32 0.70710677, %v892_v23  ;;  %v893_v28 = vmul.f32 0.5, %v889_v21  ;;  %v894_v31 = vmul.f32 0.5, %v890_v19  ;;  %v895_v35 = vmul.f32 0.5, %v891_v22 }
  0x76   : > { %1256 = verf.f32 %v898_v39  ;;  %v896_v32 = vmul.f32 0.5, %v892_v23 }
  0x77   : > { %1258 = verf.f32 %v899_v26 }
  0x78   : > { %1260 = verf.f32 %v900_v48 }
  0x79   : > { %1262 = verf.f32 %v901_v27 }
  0x83   : > { %v1257_v29 = vpop.eup %1256 }
  0x84   : > { %v1259_v14 = vpop.eup %1258  ;;  %v906_v36 = vadd.f32 1.0, %v1257_v29 }
  0x85   : > { %v1261_v40 = vpop.eup %1260  ;;  %v907_v41 = vadd.f32 1.0, %v1259_v14 }
  0x86   : > { %v1263_v42 = vpop.eup %1262  ;;  %v908_v43 = vadd.f32 1.0, %v1261_v40  ;;  %v910_v44 = vmul.f32 %v906_v36, %v893_v28 }
  0x87   : > { %v909_v47 = vadd.f32 1.0, %v1263_v42  ;;  %v911_v38 = vmul.f32 %v907_v41, %v894_v31 }
  0x88   : > { %v912_v50 = vmul.f32 %v908_v43, %v895_v35  ;;  %v926_v59 = vadd.f32 %v918_v37, %v910_v44 }
  0x89   : > { %v913_v51 = vmul.f32 %v909_v47, %v896_v32  ;;  %v927_v52 = vadd.f32 %v919_v15, %v911_v38 }
  0x8a   : > { %v928_v16 = vadd.f32 %v920_v46, %v912_v50 }
  0x8b   : > { %v929_v33 = vadd.f32 %v921_v49, %v913_v51  ;;  %v934_v53 = vcombine.low %v926_v59, %v927_v52 }
  0x8d   : > { %v935_v60 = vcombine.low %v928_v16, %v929_v33 }
  0x8f   : > { %v938_v17 = vpack.c.bf16 %v935_v60, %v934_v53 }
  0x91   : > { %1207 = vmatmul.mubr.msk.bf16.vlgmr.msra.gmra.mxu0 %vm962_vm3, %v938_v17 }
 0x151   : > { %v1000_v13 = vpop.f32.mrf.mxu0 }
 0x152   : > { %v1001_v54 = vadd.f32 %v1188_v24, %v1000_v13 }
 0x153   : > { %v1208_v55 = vpop.f32.mrf.mxu0 }
 0x154   : > { %v1009_v30 = vmul.f32 0.70710677, %v1001_v54  ;;  %v1007_v62 = vmul.f32 0.5, %v1001_v54 }
 0x155   : > { %v1003_v56 = vpop.f32.mrf.mxu0 }
 0x156   : > { %1264 = verf.f32 %v1009_v30  ;;  %v1004_v57 = vadd.f32 %v1188_v24, %v1003_v56 }
 0x157   : > { %v1209_v58 = vpop.f32.mrf.mxu0 }
 0x158   : > { %v1010_v34 = vmul.f32 0.70710677, %v1004_v57  ;;  %v1008_v3 = vmul.f32 0.5, %v1004_v57 }
 0x15a   : > { %1266 = verf.f32 %v1010_v34 }
 0x163   : > { %v1265_v61 = vpop.eup %1264 }
 0x164   : > { %v1013_v63 = vadd.f32 1.0, %v1265_v61 }
 0x166   : > { %v1015_v0 = vmul.f32 %v1013_v63, %v1007_v62 }
 0x167   : > { %v1267_v1 = vpop.eup %1266 }
 0x168   : > { %v1019_v2 = vcombine.high %v1015_v0, %v1015_v0  ;;  %v1014_v20 = vadd.f32 1.0, %v1267_v1  ;;  %1026 = sbr.rel (%p1192_p8) target bundleno = 368 (0x170), region = 48 }
 0x16a   : > { %v1016_v4 = vmul.f32 %v1014_v20, %v1008_v3 }
 0x16c   : > { %v1020_v5 = vcombine.high %v1016_v4, %v1016_v4 }
 0x16d   : > { %vm1028_vm4 = vcmask 257024  }
 0x16e   : > { %1029 = vst.msk [vmem:[#allocation2 + $0x12] sm:$0xf] %vm1028_vm4, %v1015_v0  ;;  %1030 = vst.msk [vmem:[#allocation2 + $0x1a] sm:$0xf] %vm1028_vm4, %v1019_v2 }
 0x16f   : > { %1031 = vst.msk [vmem:[#allocation2 + $0x22] sm:$0xf] %vm1028_vm4, %v1016_v4  ;;  %1032 = vst.msk [vmem:[#allocation2 + $0x2a] sm:$0xf] %vm1028_vm4, %v1020_v5 }
 0x170 PF: > { %p1193_p9 = scmp.ne.s32.totalorder %s1298_s18, 2 }
 0x172   : > { %1036 = sbr.rel (%p1193_p9) target bundleno = 401 (0x191), region = 52 }
 0x177   : > { %v1041_v6 = vmul.f32 0.70710677, %v1015_v0  ;;  %v1042_v7 = vmul.f32 0.70710677, %v1019_v2  ;;  %v1043_v8 = vmul.f32 0.70710677, %v1016_v4 }
 0x178   : > { %v1044_v9 = vmul.f32 0.70710677, %v1020_v5  ;;  %v1037_v10 = vmul.f32 0.5, %v1015_v0  ;;  %v1038_v45 = vmul.f32 0.5, %v1019_v2  ;;  %v1039_v18 = vmul.f32 0.5, %v1016_v4 }
 0x179   : > { %1268 = verf.f32 %v1041_v6  ;;  %v1040_v22 = vmul.f32 0.5, %v1020_v5  ;;  %vm1061_vm5 = vcmask 254976  }
 0x17a   : > { %1270 = verf.f32 %v1042_v7 }
 0x17b   : > { %1272 = verf.f32 %v1043_v8 }
 0x17c   : > { %1274 = verf.f32 %v1044_v9 }
 0x186   : > { %v1269_v25 = vpop.eup %1268 }
 0x187   : > { %v1271_v11 = vpop.eup %1270  ;;  %v1049_v12 = vadd.f32 1.0, %v1269_v25 }
 0x188   : > { %v1273_v21 = vpop.eup %1272  ;;  %v1050_v19 = vadd.f32 1.0, %v1271_v11 }
 0x189   : > { %v1275_v23 = vpop.eup %1274  ;;  %v1053_v39 = vmul.f32 %v1049_v12, %v1037_v10  ;;  %v1051_v26 = vadd.f32 1.0, %v1273_v21 }
 0x18a   : > { %v1054_v48 = vmul.f32 %v1050_v19, %v1038_v45  ;;  %v1052_v27 = vadd.f32 1.0, %v1275_v23 }
 0x18b   : > { %v1057_v28 = vpack.c.bf16 %v1053_v39, %v1053_v39  ;;  %v1055_v29 = vmul.f32 %v1051_v26, %v1039_v18 }
 0x18c   : > { %v1058_v31 = vpack.c.bf16 %v1054_v48, %v1054_v48  ;;  %v1056_v14 = vmul.f32 %v1052_v27, %v1040_v22 }
 0x18d   : > { %1062 = vst.msk [vmem:[%s1411_s6] sm:$0x3] %vm1061_vm5, %v1057_v28  ;;  %v1059_v35 = vpack.c.bf16 %v1055_v29, %v1055_v29 }
 0x18e   : > { %1063 = vst.msk [vmem:[%s1411_s6 + $0x2] sm:$0x3] %vm1061_vm5, %v1058_v31  ;;  %v1060_v36 = vpack.c.bf16 %v1056_v14, %v1056_v14 }
 0x18f   : > { %1064 = vst.msk [vmem:[%s1411_s6 + $0x4] sm:$0x3] %vm1061_vm5, %v1059_v35 }
 0x190   : > { %1065 = vst.msk [vmem:[%s1411_s6 + $0x6] sm:$0x3] %vm1061_vm5, %v1060_v36 }
 0x191 PF: > { %s15_s22 = sadd.s32 1, %s1314_s22   ;;  %s1652_s18 = smov %s1306_s20 }
 0x192   : > { %p12_p10 = scmp.ge.s32.totalorder %s15_s22, 8   ;;  %s1653_s19 = smov %s1310_s21 }
 0x193   : > { %s1654_s20 = smov %s1657_s23  ;;  %s1655_s21 = smov %s1661_s24 }
 0x194   :  { %14 = sbr.rel (!%p12_p10) target bundleno = 3 (0x3), region = 96 }

</bundles_post_ra>
